<compile_context>
chip_gen: v7x
topology: tpu7x:2x2x1
jax: 0.10.0
libtpu: 0.0.40
codegen_flags: <defaults>
</compile_context>

<pallas_src>
import functools

import jax
import jax.numpy as jnp
from jax.experimental import pallas as pl
from jax.experimental.pallas import tpu as pltpu


def _round_up(x, m):
    return ((x + m - 1) // m) * m


def _fused_conv_kernel(x_ref, w_ref, b_ref, o_ref, *, taps, tp, wp):
    # x_ref: (1, FLAT, Cin)       whole padded sample, flattened over (H, W)
    # w_ref: (KH*KW, Cin, Cout)   per-tap weight matrices
    # b_ref: (1, Cout)            bias
    # o_ref: (1, Cout, TP)        NCHW-oriented, lane-dense output tile
    t = pl.program_id(1)
    base = t * tp

    acc = None
    for idx, (kh, kw) in enumerate(taps):
        # Shifted row-window for this tap: flat position p needs input row p + kh*Wp + kw.
        x_tap = x_ref[0, pl.ds(base + kh * wp + kw, tp), :]          # (TP, Cin)
        d = jnp.dot(x_tap, w_ref[idx], preferred_element_type=jnp.float32)  # MXU
        acc = d if acc is None else acc + d                          # (TP, Cout) f32

    acc = acc + b_ref[...]                 # broadcast (1, Cout)
    acc = jnp.maximum(acc, 0.1 * acc)      # LeakyReLU(negative_slope=0.1)
    o_ref[0] = acc.T.astype(o_ref.dtype)   # (Cout, TP) -> lane-dense NCHW store


def conv_block_forward(x_nchw, weight, bias, *, stride, padding,
                       use_bf16=False, tile_p=512):
    """Conv2d + LeakyReLU(0.1), matching torch.nn.Conv2d semantics (NCHW in / NCHW out).

    x_nchw : (N, Cin, H, W)  float32
    weight : (Cout, Cin, KH, KW) float32   (PyTorch layout)
    bias   : (Cout,) float32
    """
    N, Cin, H, W = x_nchw.shape
    Cout, _, KH, KW = weight.shape
    s = stride

    Hout = (H + 2 * padding - KH) // s + 1
    Wout = (W + 2 * padding - KW) // s + 1

    # Dense (stride-1) conv geometry; strided output = dense output subsampled.
    Hp = H + 2 * padding
    Wp = W + 2 * padding
    Hd = Hp - KH + 1
    Wd = Wp - KW + 1

    # Flat dense output positions (positions with w in [Wd, Wp) are garbage, sliced off).
    P = Hd * Wp
    TP = tile_p
    if P < TP:
        TP = _round_up(P, 128)
    else:
        n_t = -(-P // TP)
        TP = _round_up(-(-P // n_t), 128)
    P_pad = _round_up(P, TP)

    # Enough flat input rows so every tap read (p + kh*Wp + kw) stays in bounds,
    # folded into a single jnp.pad (no extra HBM pass).
    flat_rows_needed = P_pad + (KH - 1) * Wp + (KW - 1)
    Hp_ext = -(-flat_rows_needed // Wp)
    pad_bottom = Hp_ext - H - padding
    FLAT = Hp_ext * Wp

    # ---- glue: NCHW -> NHWC, pad, flatten (H, W) ----
    x_nhwc = jnp.transpose(x_nchw, (0, 2, 3, 1))                    # (N, H, W, Cin)
    if use_bf16:
        x_nhwc = x_nhwc.astype(jnp.bfloat16)
    xp = jnp.pad(x_nhwc, ((0, 0), (padding, pad_bottom), (padding, padding), (0, 0)))
    xf = xp.reshape(N, FLAT, Cin)                                   # free reshape

    # weight (Cout, Cin, KH, KW) -> (KH, KW, Cin, Cout) -> (KH*KW, Cin, Cout)
    w_taps = jnp.transpose(weight, (2, 3, 1, 0)).reshape(KH * KW, Cin, Cout)
    if use_bf16:
        w_taps = w_taps.astype(jnp.bfloat16)
    b_mat = bias.reshape(1, Cout).astype(jnp.float32)

    taps = tuple((kh, kw) for kh in range(KH) for kw in range(KW))
    kernel = functools.partial(_fused_conv_kernel, taps=taps, tp=TP, wp=Wp)

    grid = (N, P_pad // TP)

    # ---- VMEM budget / cost hints ----
    lane = 128
    itm = 2 if use_bf16 else 4
    in_block_bytes = _round_up(FLAT, 8) * _round_up(Cin, lane) * itm
    out_block_bytes = _round_up(Cout, 8) * TP * 4
    w_bytes = KH * KW * _round_up(Cin, 8) * _round_up(Cout, lane) * itm
    scratch_bytes = 4 * TP * _round_up(Cout, lane) * 4
    vmem_est = 2 * (in_block_bytes + out_block_bytes) + w_bytes + scratch_bytes
    vmem_limit = int(min(max(2 * vmem_est, 32 << 20), 64 << 20))

    cost = pl.CostEstimate(
        flops=2 * N * P_pad * KH * KW * Cin * Cout,
        transcendentals=0,
        bytes_accessed=N * FLAT * Cin * itm + N * Cout * P_pad * 4
                       + KH * KW * Cin * Cout * itm,
    )

    out_flat = pl.pallas_call(
        kernel,
        out_shape=jax.ShapeDtypeStruct((N, Cout, P_pad), jnp.float32),
        grid=grid,
        in_specs=[
            pl.BlockSpec((1, FLAT, Cin), lambda n, t: (n, 0, 0)),       # re-fetched only when n changes
            pl.BlockSpec((KH * KW, Cin, Cout), lambda n, t: (0, 0, 0)),
            pl.BlockSpec((1, Cout), lambda n, t: (0, 0)),
        ],
        out_specs=pl.BlockSpec((1, Cout, TP), lambda n, t: (n, 0, t)),
        compiler_params=pltpu.CompilerParams(
            dimension_semantics=("parallel", "parallel"),
            vmem_limit_bytes=vmem_limit),
        cost_estimate=cost,
    )(xf, w_taps, b_mat)

    # ---- glue: drop padded/garbage positions, already in NCHW orientation ----
    out = out_flat[:, :, :P].reshape(N, Cout, Hd, Wp)[:, :, :, :Wd]  # dense conv result
    if s > 1:
        out = out[:, :, ::s, ::s]                                    # strided conv = dense subsampled
    return out                                                        # (N, Cout, Hout, Wout)


if __name__ == "__main__":
    # Small deterministic example consistent with ConvBlock(4, 8, 3, 1, 1)
    N, Cin, H, W = 2, 4, 16, 16
    Cout, KH, KW = 8, 3, 3
    stride, padding = 1, 1

    key = jax.random.PRNGKey(0)
    kx, kw_, kb = jax.random.split(key, 3)

    x = jax.random.normal(kx, (N, Cin, H, W), dtype=jnp.float32)
    fan_in = Cin * KH * KW
    bound = 1.0 / (fan_in ** 0.5)
    weight = jax.random.uniform(kw_, (Cout, Cin, KH, KW), jnp.float32, -bound, bound)
    bias = jax.random.uniform(kb, (Cout,), jnp.float32, -bound, bound)

    # plain-JAX reference (matches torch.nn.Conv2d + LeakyReLU(0.1))
    ref = jax.lax.conv_general_dilated(
        x, weight, window_strides=(stride, stride),
        padding=[(padding, padding), (padding, padding)],
        dimension_numbers=("NCHW", "OIHW", "NCHW"),
    ) + bias.reshape(1, Cout, 1, 1)
    ref = jnp.where(ref >= 0, ref, 0.1 * ref)

    # f32 path (tight check)
    fwd = jax.jit(functools.partial(conv_block_forward, stride=stride,
                                    padding=padding, use_bf16=False))
    out = fwd(x, weight, bias)
    jax.block_until_ready(out)
    assert out.shape == (N, Cout, H, W), out.shape
    assert jnp.allclose(out, ref, atol=1e-4, rtol=1e-4)

    # bf16-operand path (v6e/v7x MXU-native; f32 accumulation) -- looser check
    fwd_bf16 = jax.jit(functools.partial(conv_block_forward, stride=stride,
                                         padding=padding, use_bf16=True))
    out_bf16 = fwd_bf16(x, weight, bias)
    jax.block_until_ready(out_bf16)
    assert jnp.allclose(out_bf16, ref, atol=5e-2, rtol=5e-2)

    print("KERNEL_OK")
</pallas_src>

<mosaic_0001>
module attributes {stable_mosaic.version = 11 : i64} {
  func.func @_fused_conv_kernel(%arg0: i32, %arg1: i32, %arg2: memref<1x432x4xf32, #tpu.memory_space<vmem>>, %arg3: memref<9x4x8xf32, #tpu.memory_space<vmem>>, %arg4: memref<1x8xf32, #tpu.memory_space<vmem>>, %arg5: memref<1x8x384xf32, #tpu.memory_space<vmem>>) attributes {dimension_semantics = [#tpu.dimension_semantics<parallel>, #tpu.dimension_semantics<parallel>], iteration_bounds = array<i64: 2, 1>, scalar_prefetch = 0 : i64, scratch_operands = 0 : i64, tpu.core_type = #tpu.core_type<tc>, window_params = [{transform_indices = @transform_0, window_bounds = array<i64: 1, 432, 4>}, {pipeline_mode = #tpu.pipeline_mode<synchronous>, transform_indices = @transform_1, window_bounds = array<i64: 9, 4, 8>}, {pipeline_mode = #tpu.pipeline_mode<synchronous>, transform_indices = @transform_2, window_bounds = array<i64: 1, 8>}, {transform_indices = @transform_3, window_bounds = array<i64: 1, 8, 384>}]} {
    %c384_i32 = arith.constant 384 : i32
    %0 = arith.muli %arg1, %c384_i32 : i32
    %c0_i32 = arith.constant 0 : i32
    %1 = arith.addi %0, %c0_i32 : i32
    %c0_i32_0 = arith.constant 0 : i32
    %2 = arith.addi %1, %c0_i32_0 : i32
    %c0 = arith.constant 0 : index
    %3 = arith.index_cast %2 : i32 to index
    %c0_1 = arith.constant 0 : index
    %4 = vector.load %arg2[%c0, %3, %c0_1] : memref<1x432x4xf32, #tpu.memory_space<vmem>>, vector<1x384x4xf32>
    %5 = vector.shape_cast %4 : vector<1x384x4xf32> to vector<384x4xf32>
    %c0_2 = arith.constant 0 : index
    %c0_3 = arith.constant 0 : index
    %c0_4 = arith.constant 0 : index
    %6 = vector.load %arg3[%c0_2, %c0_3, %c0_4] : memref<9x4x8xf32, #tpu.memory_space<vmem>>, vector<1x4x8xf32>
    %7 = vector.shape_cast %6 : vector<1x4x8xf32> to vector<4x8xf32>
    %cst = arith.constant dense<0.000000e+00> : vector<384x8xf32>
    %8 = tpu.matmul %5, %7, %cst {dimension_numbers = #tpu.dot_dimension_numbers<[1], [0], [0], [1], [0, 0, 1, 1], [], []>} : vector<384x4xf32>, vector<4x8xf32>, vector<384x8xf32> -> vector<384x8xf32>
    %c0_i32_5 = arith.constant 0 : i32
    %9 = arith.addi %0, %c0_i32_5 : i32
    %c1_i32 = arith.constant 1 : i32
    %10 = arith.addi %9, %c1_i32 : i32
    %c0_6 = arith.constant 0 : index
    %11 = arith.index_cast %10 : i32 to index
    %c0_7 = arith.constant 0 : index
    %12 = vector.load %arg2[%c0_6, %11, %c0_7] : memref<1x432x4xf32, #tpu.memory_space<vmem>>, vector<1x384x4xf32>
    %13 = vector.shape_cast %12 : vector<1x384x4xf32> to vector<384x4xf32>
    %c1 = arith.constant 1 : index
    %c0_8 = arith.constant 0 : index
    %c0_9 = arith.constant 0 : index
    %14 = vector.load %arg3[%c1, %c0_8, %c0_9] : memref<9x4x8xf32, #tpu.memory_space<vmem>>, vector<1x4x8xf32>
    %15 = vector.shape_cast %14 : vector<1x4x8xf32> to vector<4x8xf32>
    %cst_10 = arith.constant dense<0.000000e+00> : vector<384x8xf32>
    %16 = tpu.matmul %13, %15, %cst_10 {dimension_numbers = #tpu.dot_dimension_numbers<[1], [0], [0], [1], [0, 0, 1, 1], [], []>} : vector<384x4xf32>, vector<4x8xf32>, vector<384x8xf32> -> vector<384x8xf32>
    %17 = arith.addf %8, %16 : vector<384x8xf32>
    %c0_i32_11 = arith.constant 0 : i32
    %18 = arith.addi %0, %c0_i32_11 : i32
    %c2_i32 = arith.constant 2 : i32
    %19 = arith.addi %18, %c2_i32 : i32
    %c0_12 = arith.constant 0 : index
    %20 = arith.index_cast %19 : i32 to index
    %c0_13 = arith.constant 0 : index
    %21 = vector.load %arg2[%c0_12, %20, %c0_13] : memref<1x432x4xf32, #tpu.memory_space<vmem>>, vector<1x384x4xf32>
    %22 = vector.shape_cast %21 : vector<1x384x4xf32> to vector<384x4xf32>
    %c2 = arith.constant 2 : index
    %c0_14 = arith.constant 0 : index
    %c0_15 = arith.constant 0 : index
    %23 = vector.load %arg3[%c2, %c0_14, %c0_15] : memref<9x4x8xf32, #tpu.memory_space<vmem>>, vector<1x4x8xf32>
    %24 = vector.shape_cast %23 : vector<1x4x8xf32> to vector<4x8xf32>
    %cst_16 = arith.constant dense<0.000000e+00> : vector<384x8xf32>
    %25 = tpu.matmul %22, %24, %cst_16 {dimension_numbers = #tpu.dot_dimension_numbers<[1], [0], [0], [1], [0, 0, 1, 1], [], []>} : vector<384x4xf32>, vector<4x8xf32>, vector<384x8xf32> -> vector<384x8xf32>
    %26 = arith.addf %17, %25 : vector<384x8xf32>
    %c18_i32 = arith.constant 18 : i32
    %27 = arith.addi %0, %c18_i32 : i32
    %c0_i32_17 = arith.constant 0 : i32
    %28 = arith.addi %27, %c0_i32_17 : i32
    %c0_18 = arith.constant 0 : index
    %29 = arith.index_cast %28 : i32 to index
    %c0_19 = arith.constant 0 : index
    %30 = vector.load %arg2[%c0_18, %29, %c0_19] : memref<1x432x4xf32, #tpu.memory_space<vmem>>, vector<1x384x4xf32>
    %31 = vector.shape_cast %30 : vector<1x384x4xf32> to vector<384x4xf32>
    %c3 = arith.constant 3 : index
    %c0_20 = arith.constant 0 : index
    %c0_21 = arith.constant 0 : index
    %32 = vector.load %arg3[%c3, %c0_20, %c0_21] : memref<9x4x8xf32, #tpu.memory_space<vmem>>, vector<1x4x8xf32>
    %33 = vector.shape_cast %32 : vector<1x4x8xf32> to vector<4x8xf32>
    %cst_22 = arith.constant dense<0.000000e+00> : vector<384x8xf32>
    %34 = tpu.matmul %31, %33, %cst_22 {dimension_numbers = #tpu.dot_dimension_numbers<[1], [0], [0], [1], [0, 0, 1, 1], [], []>} : vector<384x4xf32>, vector<4x8xf32>, vector<384x8xf32> -> vector<384x8xf32>
    %35 = arith.addf %26, %34 : vector<384x8xf32>
    %c18_i32_23 = arith.constant 18 : i32
    %36 = arith.addi %0, %c18_i32_23 : i32
    %c1_i32_24 = arith.constant 1 : i32
    %37 = arith.addi %36, %c1_i32_24 : i32
    %c0_25 = arith.constant 0 : index
    %38 = arith.index_cast %37 : i32 to index
    %c0_26 = arith.constant 0 : index
    %39 = vector.load %arg2[%c0_25, %38, %c0_26] : memref<1x432x4xf32, #tpu.memory_space<vmem>>, vector<1x384x4xf32>
    %40 = vector.shape_cast %39 : vector<1x384x4xf32> to vector<384x4xf32>
    %c4 = arith.constant 4 : index
    %c0_27 = arith.constant 0 : index
    %c0_28 = arith.constant 0 : index
    %41 = vector.load %arg3[%c4, %c0_27, %c0_28] : memref<9x4x8xf32, #tpu.memory_space<vmem>>, vector<1x4x8xf32>
    %42 = vector.shape_cast %41 : vector<1x4x8xf32> to vector<4x8xf32>
    %cst_29 = arith.constant dense<0.000000e+00> : vector<384x8xf32>
    %43 = tpu.matmul %40, %42, %cst_29 {dimension_numbers = #tpu.dot_dimension_numbers<[1], [0], [0], [1], [0, 0, 1, 1], [], []>} : vector<384x4xf32>, vector<4x8xf32>, vector<384x8xf32> -> vector<384x8xf32>
    %44 = arith.addf %35, %43 : vector<384x8xf32>
    %c18_i32_30 = arith.constant 18 : i32
    %45 = arith.addi %0, %c18_i32_30 : i32
    %c2_i32_31 = arith.constant 2 : i32
    %46 = arith.addi %45, %c2_i32_31 : i32
    %c0_32 = arith.constant 0 : index
    %47 = arith.index_cast %46 : i32 to index
    %c0_33 = arith.constant 0 : index
    %48 = vector.load %arg2[%c0_32, %47, %c0_33] : memref<1x432x4xf32, #tpu.memory_space<vmem>>, vector<1x384x4xf32>
    %49 = vector.shape_cast %48 : vector<1x384x4xf32> to vector<384x4xf32>
    %c5 = arith.constant 5 : index
    %c0_34 = arith.constant 0 : index
    %c0_35 = arith.constant 0 : index
    %50 = vector.load %arg3[%c5, %c0_34, %c0_35] : memref<9x4x8xf32, #tpu.memory_space<vmem>>, vector<1x4x8xf32>
    %51 = vector.shape_cast %50 : vector<1x4x8xf32> to vector<4x8xf32>
    %cst_36 = arith.constant dense<0.000000e+00> : vector<384x8xf32>
    %52 = tpu.matmul %49, %51, %cst_36 {dimension_numbers = #tpu.dot_dimension_numbers<[1], [0], [0], [1], [0, 0, 1, 1], [], []>} : vector<384x4xf32>, vector<4x8xf32>, vector<384x8xf32> -> vector<384x8xf32>
    %53 = arith.addf %44, %52 : vector<384x8xf32>
    %c36_i32 = arith.constant 36 : i32
    %54 = arith.addi %0, %c36_i32 : i32
    %c0_i32_37 = arith.constant 0 : i32
    %55 = arith.addi %54, %c0_i32_37 : i32
    %c0_38 = arith.constant 0 : index
    %56 = arith.index_cast %55 : i32 to index
    %c0_39 = arith.constant 0 : index
    %57 = vector.load %arg2[%c0_38, %56, %c0_39] : memref<1x432x4xf32, #tpu.memory_space<vmem>>, vector<1x384x4xf32>
    %58 = vector.shape_cast %57 : vector<1x384x4xf32> to vector<384x4xf32>
    %c6 = arith.constant 6 : index
    %c0_40 = arith.constant 0 : index
    %c0_41 = arith.constant 0 : index
    %59 = vector.load %arg3[%c6, %c0_40, %c0_41] : memref<9x4x8xf32, #tpu.memory_space<vmem>>, vector<1x4x8xf32>
    %60 = vector.shape_cast %59 : vector<1x4x8xf32> to vector<4x8xf32>
    %cst_42 = arith.constant dense<0.000000e+00> : vector<384x8xf32>
    %61 = tpu.matmul %58, %60, %cst_42 {dimension_numbers = #tpu.dot_dimension_numbers<[1], [0], [0], [1], [0, 0, 1, 1], [], []>} : vector<384x4xf32>, vector<4x8xf32>, vector<384x8xf32> -> vector<384x8xf32>
    %62 = arith.addf %53, %61 : vector<384x8xf32>
    %c36_i32_43 = arith.constant 36 : i32
    %63 = arith.addi %0, %c36_i32_43 : i32
    %c1_i32_44 = arith.constant 1 : i32
    %64 = arith.addi %63, %c1_i32_44 : i32
    %c0_45 = arith.constant 0 : index
    %65 = arith.index_cast %64 : i32 to index
    %c0_46 = arith.constant 0 : index
    %66 = vector.load %arg2[%c0_45, %65, %c0_46] : memref<1x432x4xf32, #tpu.memory_space<vmem>>, vector<1x384x4xf32>
    %67 = vector.shape_cast %66 : vector<1x384x4xf32> to vector<384x4xf32>
    %c7 = arith.constant 7 : index
    %c0_47 = arith.constant 0 : index
    %c0_48 = arith.constant 0 : index
    %68 = vector.load %arg3[%c7, %c0_47, %c0_48] : memref<9x4x8xf32, #tpu.memory_space<vmem>>, vector<1x4x8xf32>
    %69 = vector.shape_cast %68 : vector<1x4x8xf32> to vector<4x8xf32>
    %cst_49 = arith.constant dense<0.000000e+00> : vector<384x8xf32>
    %70 = tpu.matmul %67, %69, %cst_49 {dimension_numbers = #tpu.dot_dimension_numbers<[1], [0], [0], [1], [0, 0, 1, 1], [], []>} : vector<384x4xf32>, vector<4x8xf32>, vector<384x8xf32> -> vector<384x8xf32>
    %71 = arith.addf %62, %70 : vector<384x8xf32>
    %c36_i32_50 = arith.constant 36 : i32
    %72 = arith.addi %0, %c36_i32_50 : i32
    %c2_i32_51 = arith.constant 2 : i32
    %73 = arith.addi %72, %c2_i32_51 : i32
    %c0_52 = arith.constant 0 : index
    %74 = arith.index_cast %73 : i32 to index
    %c0_53 = arith.constant 0 : index
    %75 = vector.load %arg2[%c0_52, %74, %c0_53] : memref<1x432x4xf32, #tpu.memory_space<vmem>>, vector<1x384x4xf32>
    %76 = vector.shape_cast %75 : vector<1x384x4xf32> to vector<384x4xf32>
    %c8 = arith.constant 8 : index
    %c0_54 = arith.constant 0 : index
    %c0_55 = arith.constant 0 : index
    %77 = vector.load %arg3[%c8, %c0_54, %c0_55] : memref<9x4x8xf32, #tpu.memory_space<vmem>>, vector<1x4x8xf32>
    %78 = vector.shape_cast %77 : vector<1x4x8xf32> to vector<4x8xf32>
    %cst_56 = arith.constant dense<0.000000e+00> : vector<384x8xf32>
    %79 = tpu.matmul %76, %78, %cst_56 {dimension_numbers = #tpu.dot_dimension_numbers<[1], [0], [0], [1], [0, 0, 1, 1], [], []>} : vector<384x4xf32>, vector<4x8xf32>, vector<384x8xf32> -> vector<384x8xf32>
    %80 = arith.addf %71, %79 : vector<384x8xf32>
    %c0_57 = arith.constant 0 : index
    %c0_58 = arith.constant 0 : index
    %81 = vector.load %arg4[%c0_57, %c0_58] : memref<1x8xf32, #tpu.memory_space<vmem>>, vector<1x8xf32>
    %82 = vector.broadcast %81 : vector<1x8xf32> to vector<384x8xf32>
    %83 = arith.addf %80, %82 : vector<384x8xf32>
    %cst_59 = arith.constant 1.000000e-01 : f32
    %84 = vector.broadcast %cst_59 : f32 to vector<384x8xf32>
    %85 = arith.mulf %84, %83 : vector<384x8xf32>
    %86 = arith.maximumf %83, %85 : vector<384x8xf32>
    %87 = tpu.transpose %86, [1, 0] : vector<384x8xf32> -> vector<8x384xf32>
    %c0_60 = arith.constant 0 : index
    %c0_61 = arith.constant 0 : index
    %c0_62 = arith.constant 0 : index
    %88 = vector.load %arg5[%c0_60, %c0_61, %c0_62] : memref<1x8x384xf32, #tpu.memory_space<vmem>>, vector<1x8x384xf32>
    %89 = vector.shape_cast %88 : vector<1x8x384xf32> to vector<8x384xf32>
    %90 = vector.shape_cast %87 : vector<8x384xf32> to vector<1x8x384xf32>
    tpu.vector_store %arg5[%c0_60, %c0_61, %c0_62], %90 {strides = array<i32>} : memref<1x8x384xf32, #tpu.memory_space<vmem>>, vector<1x8x384xf32>,
    return
  }
  func.func @transform_0(%arg0: i32, %arg1: i32) -> (i32, i32, i32) {
    %c0_i32 = arith.constant 0 : i32
    %c0_i32_0 = arith.constant 0 : i32
    %c0_i32_1 = arith.constant 0 : i32
    return %arg0, %c0_i32, %c0_i32_0 : i32, i32, i32
  }
  func.func @transform_1(%arg0: i32, %arg1: i32) -> (i32, i32, i32) {
    %c0_i32 = arith.constant 0 : i32
    %c0_i32_0 = arith.constant 0 : i32
    %c0_i32_1 = arith.constant 0 : i32
    %c0_i32_2 = arith.constant 0 : i32
    return %c0_i32, %c0_i32_0, %c0_i32_1 : i32, i32, i32
  }
  func.func @transform_2(%arg0: i32, %arg1: i32) -> (i32, i32) {
    %c0_i32 = arith.constant 0 : i32
    %c0_i32_0 = arith.constant 0 : i32
    %c0_i32_1 = arith.constant 0 : i32
    return %c0_i32, %c0_i32_0 : i32, i32
  }
  func.func @transform_3(%arg0: i32, %arg1: i32) -> (i32, i32, i32) {
    %c0_i32 = arith.constant 0 : i32
    %c0_i32_0 = arith.constant 0 : i32
    return %arg0, %c0_i32, %arg1 : i32, i32, i32
  }
}

</mosaic_0001>

<bundles_post_ra>
// kernel: conv_block_forward.1
= control target key start
LH: loop header
LB: loop body
LE: loop exit
PB: predicated region body
PF: predicated region fallthrough
CT: control target
= control target key end

     0   :  { %s7831_s12 = smov 0   ;;  %s7833_s13 = smov 0   ;;  %s9192_s0 = inlined_call_operand.vmem [shape: f32[2,432,4], index: 0, kind: input, shape index: {}]   ;;  %s9193_s1 = inlined_call_operand.vmem [shape: f32[9,4,8], index: 1, kind: input, shape index: {}]   ;;  %s9194_s2 = inlined_call_operand.vmem [shape: f32[1,8], index: 2, kind: input, shape index: {}]   ;;  %s9195_s3 = inlined_call_operand.vmem [shape: f32[2,8,384], index: 3, kind: output, shape index: {}]  }
   0x1   :  { %s7835_s14 = smov 0  }
   0x2 LB: > { %s25_s15 = sadd.s32 1, %s7805_s13  ;;  %p5428_p0 = scmp.ge.s32.totalorder %s7809_s14, 1  ;;  %s7809_s14 = sphi %s7835_s14, %s13_s14   ;;  %s7805_s13 = sphi %s7833_s13, %s9197_s13   ;;  %s7801_s12 = sphi %s7831_s12, %s9196_s12  }
   0x3   : > { %p27_p1 = scmp.ge.s32.totalorder %s25_s15, 2  ;;  %p151_p2 = scmp.lt.s32.totalorder %s7809_s14, 3 }
   0x5   : > { %s9199_s15 = smov (%p27_p1, %s25_s15), 0  ;;  %p152_p3 = pnand %p5428_p0, %p151_p2 }
   0x6   : > { %v5479_v0 = vld [vmem:[%s9193_s1 + $0x4] sm:$0xf] (!%p152_p3)  ;;  %vm442_vm0 = vcmask (!%p152_p3), 1043456   ;;  %v7855_v1 = vld [vmem:[%s9193_s1 + $0x10] sm:$0xf] (!%p152_p3)  ;;  %p179_p4 = scmp.lt.s32.totalorder (!%p152_p3), %s7801_s12, 1 }
   0x7   : > { %155 = sbr.rel (%p152_p3) target bundleno = 771 (0x303), region = 32  ;;  %6708 = vmatprep.subr.msk.mxu1 (!%p152_p3), %vm442_vm0, %v5479_v0  ;;  %7004 = vmatprep.subr.msk.mxu0 (!%p152_p3), %vm442_vm0, %v7855_v1  ;;  %v244_v2 = vld [vmem:[%s9193_s1] sm:$0xf] (!%p152_p3)  ;;  %v5920_v3 = vld [vmem:[%s9193_s1 + $0x14] sm:$0xf] (!%p152_p3)  ;;  %vm297_vm1 = vcmask (!%p152_p3), 31744  }
   0x8   : > { %6709 = vmatpush3.msk.msra.mxu1 (!%p152_p3), %vm442_vm0, %v5479_v0  ;;  %7005 = vmatpush3.msk.msra.mxu0 (!%p152_p3), %vm442_vm0, %v7855_v1  ;;  %v7892_v10 = vld [vmem:[%s9193_s1 + $0x18] sm:$0xf] (!%p152_p3)  ;;  %v7897_v11 = vld [vmem:[%s9193_s1 + $0x8] sm:$0xf] (!%p152_p3)  ;;  %v8004_v60 = vld [vmem:[%s9193_s1 + $0x1c] sm:$0xf] (!%p152_p3) }
   0x9   : > { %6782 = vmatprep.subr.msk.mxu1 (!%p152_p3), %vm442_vm0, %v244_v2  ;;  %7078 = vmatprep.subr.msk.mxu0 (!%p152_p3), %vm442_vm0, %v5920_v3 }
   0xe   : > { %s9201_s12 = smov (!%p179_p4, %s7801_s12), 1 }
   0xf   : > { %s7760_s24 = smul.u32 432, %s9201_s12 }
  0x10   : > { %s7761_s19 = smul.u32 24, %s9201_s12 }
  0x11   : > { %s7877_s27 = scalar_lea.vmem %s9192_s0, %s7760_s24 }
  0x12   : > { %v5431_v4 = vld [vmem:[%s7877_s27 + $0x1] sm:$0xff]  ;;  %v5774_v5 = vld [vmem:[%s7877_s27 + $0x13] sm:$0xff]  ;;  %v5432_v6 = vld [vmem:[%s7877_s27 + $0x9] sm:$0xff]  ;;  %s192_s22 = scalar_lea.vmem %s9195_s3, %s7761_s19 }
  0x13   : > { %6710 = vmatprep.mubr.msk.f32.mxu1 %vm297_vm1, %v5431_v4  ;;  %7006 = vmatprep.mubr.msk.f32.mxu0 %vm297_vm1, %v5774_v5  ;;  %v5775_v7 = vld [vmem:[%s7877_s27 + $0x1b] sm:$0xff]  ;;  %v5433_v8 = vld [vmem:[%s7877_s27 + $0x11] sm:$0xff]  ;;  %v5776_v9 = vld [vmem:[%s7877_s27 + $0x23] sm:$0xff] }
  0x14   : > { %6711 = vmatmul.mubr.msk.f32.vlgmr.msra.gmra.mrb[0].mxu1 %vm297_vm1, %v5432_v6  ;;  %7007 = vmatmul.mubr.msk.f32.vlgmr.msra.gmra.mrb[0].mxu0 %vm297_vm1, %v5775_v7  ;;  %v5434_v12 = vld [vmem:[%s7877_s27 + $0x19] sm:$0xff]  ;;  %v5777_v13 = vld [vmem:[%s7877_s27 + $0x2b] sm:$0xff]  ;;  %v5435_v14 = vld [vmem:[%s7877_s27 + $0x21] sm:$0xff] }
  0x15   : > { %6783 = vmatpush3.msk.msra.mxu1 %vm442_vm0, %v244_v2  ;;  %7079 = vmatpush3.msk.msra.mxu0 %vm442_vm0, %v5920_v3  ;;  %v5778_v15 = vld [vmem:[%s7877_s27 + $0x33] sm:$0xff]  ;;  %v5436_v16 = vld [vmem:[%s7877_s27 + $0x29] sm:$0xff]  ;;  %v5779_v17 = vld [vmem:[%s7877_s27 + $0x3b] sm:$0xff] }
  0x16   : > { %6713 = vmatprep.mubr.msk.f32.mxu1 %vm297_vm1, %v5433_v8  ;;  %7009 = vmatprep.mubr.msk.f32.mxu0 %vm297_vm1, %v5776_v9  ;;  %v5437_v18 = vld [vmem:[%s7877_s27 + $0x31] sm:$0xff]  ;;  %v5780_v19 = vld [vmem:[%s7877_s27 + $0x43] sm:$0xff]  ;;  %v5438_v20 = vld [vmem:[%s7877_s27 + $0x39] sm:$0xff] }
  0x17   : > { %7152 = vmatprep.subr.msk.mxu0 %vm442_vm0, %v7892_v10  ;;  %6856 = vmatprep.subr.msk.mxu1 %vm442_vm0, %v7897_v11  ;;  %v5781_v21 = vld [vmem:[%s7877_s27 + $0x4b] sm:$0xff]  ;;  %v5439_v22 = vld [vmem:[%s7877_s27 + $0x41] sm:$0xff]  ;;  %v5782_v23 = vld [vmem:[%s7877_s27 + $0x53] sm:$0xff] }
  0x18   : > { %6714 = vmatmul.mubr.msk.f32.gmra.mrb[2].mxu1 %vm297_vm1, %v5434_v12  ;;  %7010 = vmatmul.mubr.msk.f32.gmra.mrb[2].mxu0 %vm297_vm1, %v5777_v13  ;;  %v5440_v24 = vld [vmem:[%s7877_s27 + $0x49] sm:$0xff]  ;;  %v5783_v25 = vld [vmem:[%s7877_s27 + $0x5b] sm:$0xff]  ;;  %v5441_v26 = vld [vmem:[%s7877_s27 + $0x51] sm:$0xff] }
  0x19   : > { %6716 = vmatprep.mubr.msk.f32.mxu1 %vm297_vm1, %v5435_v14  ;;  %7012 = vmatprep.mubr.msk.f32.mxu0 %vm297_vm1, %v5778_v15  ;;  %v5784_v27 = vld [vmem:[%s7877_s27 + $0x63] sm:$0xff]  ;;  %v5442_v28 = vld [vmem:[%s7877_s27 + $0x59] sm:$0xff]  ;;  %v5785_v29 = vld [vmem:[%s7877_s27 + $0x6b] sm:$0xff] }
  0x1a   : > { %v5443_v30 = vld [vmem:[%s7877_s27 + $0x61] sm:$0xff]  ;;  %v5786_v31 = vld [vmem:[%s7877_s27 + $0x73] sm:$0xff]  ;;  %v5444_v32 = vld [vmem:[%s7877_s27 + $0x69] sm:$0xff] }
  0x1b   : > { %v5787_v33 = vld [vmem:[%s7877_s27 + $0x7b] sm:$0xff]  ;;  %v5445_v34 = vld [vmem:[%s7877_s27 + $0x71] sm:$0xff]  ;;  %v5788_v35 = vld [vmem:[%s7877_s27 + $0x83] sm:$0xff] }
  0x1c   : > { %6717 = vmatmul.mubr.msk.f32.gmra.mrb[4].mxu1 %vm297_vm1, %v5436_v16  ;;  %7013 = vmatmul.mubr.msk.f32.gmra.mrb[4].mxu0 %vm297_vm1, %v5779_v17  ;;  %v5446_v36 = vld [vmem:[%s7877_s27 + $0x79] sm:$0xff]  ;;  %v5789_v37 = vld [vmem:[%s7877_s27 + $0x8b] sm:$0xff]  ;;  %v5447_v38 = vld [vmem:[%s7877_s27 + $0x81] sm:$0xff] }
  0x1d   : > { %6719 = vmatprep.mubr.msk.f32.mxu1 %vm297_vm1, %v5437_v18  ;;  %7015 = vmatprep.mubr.msk.f32.mxu0 %vm297_vm1, %v5780_v19  ;;  %v5790_v39 = vld [vmem:[%s7877_s27 + $0x93] sm:$0xff]  ;;  %v5448_v40 = vld [vmem:[%s7877_s27 + $0x89] sm:$0xff]  ;;  %v5791_v41 = vld [vmem:[%s7877_s27 + $0x9b] sm:$0xff] }
  0x1e   : > { %v5449_v42 = vld [vmem:[%s7877_s27 + $0x91] sm:$0xff]  ;;  %v5792_v43 = vld [vmem:[%s7877_s27 + $0xa3] sm:$0xff]  ;;  %v5450_v44 = vld [vmem:[%s7877_s27 + $0x99] sm:$0xff] }
  0x1f   : > { %v5793_v45 = vld [vmem:[%s7877_s27 + $0xab] sm:$0xff]  ;;  %v5451_v46 = vld [vmem:[%s7877_s27 + $0xa1] sm:$0xff]  ;;  %v5794_v47 = vld [vmem:[%s7877_s27 + $0xb3] sm:$0xff] }
  0x20   : > { %6720 = vmatmul.mubr.msk.f32.gmra.mrb[6].mxu1 %vm297_vm1, %v5438_v20  ;;  %7016 = vmatmul.mubr.msk.f32.gmra.mrb[6].mxu0 %vm297_vm1, %v5781_v21  ;;  %v5452_v48 = vld [vmem:[%s7877_s27 + $0xa9] sm:$0xff]  ;;  %v5795_v49 = vld [vmem:[%s7877_s27 + $0xbb] sm:$0xff]  ;;  %v5453_v50 = vld [vmem:[%s7877_s27 + $0xb1] sm:$0xff] }
  0x21   : > { %6722 = vmatprep.mubr.msk.f32.mxu1 %vm297_vm1, %v5439_v22  ;;  %7018 = vmatprep.mubr.msk.f32.mxu0 %vm297_vm1, %v5782_v23  ;;  %v5796_v51 = vld [vmem:[%s7877_s27 + $0xc3] sm:$0xff]  ;;  %v5454_v52 = vld [vmem:[%s7877_s27 + $0xb9] sm:$0xff]  ;;  %v5797_v53 = vld [vmem:[%s7877_s27 + $0xcb] sm:$0xff] }
  0x22   : > { %v5455_v54 = vld [vmem:[%s7877_s27 + $0xc1] sm:$0xff]  ;;  %v5872_v55 = vld [vmem:[%s7877_s27 + $0x14] sm:$0xff]  ;;  %v5456_v56 = vld [vmem:[%s7877_s27 + $0xc9] sm:$0xff] }
  0x23   : > { %v5873_v57 = vld [vmem:[%s7877_s27 + $0x1c] sm:$0xff]  ;;  %v5457_v58 = vld [vmem:[%s7877_s27 + $0xd1] sm:$0xff]  ;;  %v7999_v59 = vld [vmem:[%s7877_s27 + $0x24] sm:$0xff] }
  0x24   : > { %6723 = vmatmul.mubr.msk.f32.gmra.mrb[8].mxu1 %vm297_vm1, %v5440_v24  ;;  %7019 = vmatmul.mubr.msk.f32.gmra.mrb[8].mxu0 %vm297_vm1, %v5783_v25  ;;  %v5458_v61 = vld [vmem:[%s7877_s27 + $0xd9] sm:$0xff]  ;;  %v8013_v62 = vld [vmem:[%s7877_s27 + $0x2c] sm:$0xff]  ;;  %v5459_v63 = vld [vmem:[%s7877_s27 + $0xe1] sm:$0xff] }
  0x25   : > { %6725 = vmatprep.mubr.msk.f32.mxu1 %vm297_vm1, %v5441_v26  ;;  %7021 = vmatprep.mubr.msk.f32.mxu0 %vm297_vm1, %v5784_v27  ;;  %v8019_v0 = vld [vmem:[%s7877_s27 + $0x34] sm:$0xff]  ;;  %v5460_v2 = vld [vmem:[%s7877_s27 + $0xe9] sm:$0xff]  ;;  %v8031_v3 = vld [vmem:[%s7877_s27 + $0x3c] sm:$0xff] }
  0x26   : > { %v5461_v4 = vld [vmem:[%s7877_s27 + $0xf1] sm:$0xff]  ;;  %v8035_v5 = vld [vmem:[%s7877_s27 + $0x44] sm:$0xff]  ;;  %v5462_v6 = vld [vmem:[%s7877_s27 + $0xf9] sm:$0xff] }
  0x27   : > { %v8045_v7 = vld [vmem:[%s7877_s27 + $0x4c] sm:$0xff]  ;;  %v5463_v8 = vld [vmem:[%s7877_s27 + $0x101] sm:$0xff]  ;;  %v8049_v9 = vld [vmem:[%s7877_s27 + $0x54] sm:$0xff] }
  0x28   : > { %6726 = vmatmul.mubr.msk.f32.gmra.mrb[10].mxu1 %vm297_vm1, %v5442_v28  ;;  %7022 = vmatmul.mubr.msk.f32.gmra.mrb[10].mxu0 %vm297_vm1, %v5785_v29  ;;  %v8059_v12 = vld [vmem:[%s7877_s27 + $0x5c] sm:$0xff]  ;;  %v5465_v13 = vld [vmem:[%s7877_s27 + $0x111] sm:$0xff]  ;;  %v8063_v14 = vld [vmem:[%s7877_s27 + $0x64] sm:$0xff] }
  0x29   : > { %6728 = vmatprep.mubr.msk.f32.mxu1 %vm297_vm1, %v5443_v30  ;;  %7024 = vmatprep.mubr.msk.f32.mxu0 %vm297_vm1, %v5786_v31  ;;  %v5466_v15 = vld [vmem:[%s7877_s27 + $0x119] sm:$0xff]  ;;  %v8073_v16 = vld [vmem:[%s7877_s27 + $0x6c] sm:$0xff]  ;;  %v5467_v17 = vld [vmem:[%s7877_s27 + $0x121] sm:$0xff] }
  0x2a   : > { %v8077_v18 = vld [vmem:[%s7877_s27 + $0x74] sm:$0xff]  ;;  %v5468_v19 = vld [vmem:[%s7877_s27 + $0x129] sm:$0xff]  ;;  %v8087_v20 = vld [vmem:[%s7877_s27 + $0x7c] sm:$0xff] }
  0x2b   : > { %v5469_v21 = vld [vmem:[%s7877_s27 + $0x131] sm:$0xff]  ;;  %v8091_v22 = vld [vmem:[%s7877_s27 + $0x84] sm:$0xff]  ;;  %v5470_v23 = vld [vmem:[%s7877_s27 + $0x139] sm:$0xff] }
  0x2c   : > { %6729 = vmatmul.mubr.msk.f32.gmra.mrb[12].mxu1 %vm297_vm1, %v5444_v32  ;;  %7025 = vmatmul.mubr.msk.f32.gmra.mrb[12].mxu0 %vm297_vm1, %v5787_v33  ;;  %v8101_v24 = vld [vmem:[%s7877_s27 + $0x8c] sm:$0xff]  ;;  %v5471_v25 = vld [vmem:[%s7877_s27 + $0x141] sm:$0xff]  ;;  %v8105_v26 = vld [vmem:[%s7877_s27 + $0x94] sm:$0xff] }
  0x2d   : > { %6731 = vmatprep.mubr.msk.f32.mxu1 %vm297_vm1, %v5445_v34  ;;  %7027 = vmatprep.mubr.msk.f32.mxu0 %vm297_vm1, %v5788_v35  ;;  %v5472_v27 = vld [vmem:[%s7877_s27 + $0x149] sm:$0xff]  ;;  %v8115_v28 = vld [vmem:[%s7877_s27 + $0x9c] sm:$0xff]  ;;  %v5473_v29 = vld [vmem:[%s7877_s27 + $0x151] sm:$0xff] }
  0x2e   : > { %v8119_v30 = vld [vmem:[%s7877_s27 + $0xa4] sm:$0xff]  ;;  %v5474_v31 = vld [vmem:[%s7877_s27 + $0x159] sm:$0xff]  ;;  %v8129_v32 = vld [vmem:[%s7877_s27 + $0xac] sm:$0xff] }
  0x2f   : > { %v5475_v33 = vld [vmem:[%s7877_s27 + $0x161] sm:$0xff]  ;;  %v8133_v34 = vld [vmem:[%s7877_s27 + $0xb4] sm:$0xff]  ;;  %v5476_v35 = vld [vmem:[%s7877_s27 + $0x169] sm:$0xff] }
  0x30   : > { %6732 = vmatmul.mubr.msk.f32.gmra.mrb[14].mxu1 %vm297_vm1, %v5446_v36  ;;  %7028 = vmatmul.mubr.msk.f32.gmra.mrb[14].mxu0 %vm297_vm1, %v5789_v37  ;;  %v8143_v36 = vld [vmem:[%s7877_s27 + $0xbc] sm:$0xff]  ;;  %v5477_v37 = vld [vmem:[%s7877_s27 + $0x171] sm:$0xff] }
  0x31   : > { %6734 = vmatprep.mubr.msk.f32.mxu1 %vm297_vm1, %v5447_v38  ;;  %7030 = vmatprep.mubr.msk.f32.mxu0 %vm297_vm1, %v5790_v39  ;;  %v8147_v38 = vld [vmem:[%s7877_s27 + $0xc4] sm:$0xff]  ;;  %v5478_v39 = vld [vmem:[%s7877_s27 + $0x179] sm:$0xff] }
  0x34   : > { %6735 = vmatmul.mubr.msk.f32.gmra.mrb[16].mxu1 %vm297_vm1, %v5448_v40  ;;  %7031 = vmatmul.mubr.msk.f32.gmra.mrb[16].mxu0 %vm297_vm1, %v5791_v41  ;;  %v8157_v40 = vld [vmem:[%s7877_s27 + $0xcc] sm:$0xff]  ;;  %v196_v41 = vld [vmem:[%s7877_s27] sm:$0xff] }
  0x35   : > { %6737 = vmatprep.mubr.msk.f32.mxu1 %vm297_vm1, %v5449_v42  ;;  %7033 = vmatprep.mubr.msk.f32.mxu0 %vm297_vm1, %v5792_v43  ;;  %v8161_v42 = vld [vmem:[%s7877_s27 + $0xd4] sm:$0xff]  ;;  %v197_v43 = vld [vmem:[%s7877_s27 + $0x8] sm:$0xff] }
  0x38   : > { %6738 = vmatmul.mubr.msk.f32.gmra.mrb[18].mxu1 %vm297_vm1, %v5450_v44  ;;  %7034 = vmatmul.mubr.msk.f32.gmra.mrb[18].mxu0 %vm297_vm1, %v5793_v45  ;;  %v8171_v44 = vld [vmem:[%s7877_s27 + $0xdc] sm:$0xff]  ;;  %v198_v45 = vld [vmem:[%s7877_s27 + $0x10] sm:$0xff] }
  0x39   : > { %6740 = vmatprep.mubr.msk.f32.mxu1 %vm297_vm1, %v5451_v46  ;;  %7036 = vmatprep.mubr.msk.f32.mxu0 %vm297_vm1, %v5794_v47  ;;  %v8175_v46 = vld [vmem:[%s7877_s27 + $0xe4] sm:$0xff]  ;;  %v8180_v47 = vld [vmem:[%s9193_s1 + $0xc] sm:$0xf] }
  0x3c   : > { %6741 = vmatmul.mubr.msk.f32.gmra.mrb[20].mxu1 %vm297_vm1, %v5452_v48  ;;  %7037 = vmatmul.mubr.msk.f32.gmra.mrb[20].mxu0 %vm297_vm1, %v5795_v49  ;;  %v199_v48 = vld [vmem:[%s7877_s27 + $0x18] sm:$0xff]  ;;  %v8190_v49 = vld [vmem:[%s7877_s27 + $0xec] sm:$0xff] }
  0x3d   : > { %6743 = vmatprep.mubr.msk.f32.mxu1 %vm297_vm1, %v5453_v50  ;;  %7039 = vmatprep.mubr.msk.f32.mxu0 %vm297_vm1, %v5796_v51  ;;  %v200_v50 = vld [vmem:[%s7877_s27 + $0x20] sm:$0xff]  ;;  %v8196_v51 = vld [vmem:[%s7877_s27 + $0xf4] sm:$0xff] }
  0x40   : > { %6744 = vmatmul.mubr.msk.f32.gmra.mrb[22].mxu1 %vm297_vm1, %v5454_v52  ;;  %7040 = vmatmul.mubr.msk.f32.gmra.mrb[22].mxu0 %vm297_vm1, %v5797_v53  ;;  %v8208_v52 = vld [vmem:[%s7877_s27 + $0xfc] sm:$0xff]  ;;  %v202_v53 = vld [vmem:[%s7877_s27 + $0x30] sm:$0xff] }
  0x41   : > { %6746 = vmatprep.mubr.msk.f32.mxu1 %vm297_vm1, %v5455_v54  ;;  %7080 = vmatprep.mubr.msk.f32.mxu0 %vm297_vm1, %v5872_v55  ;;  %v8212_v54 = vld [vmem:[%s7877_s27 + $0x104] sm:$0xff]  ;;  %v203_v55 = vld [vmem:[%s7877_s27 + $0x38] sm:$0xff] }
  0x44   : > { %6747 = vmatmul.mubr.msk.f32.gmra.mrb[24].mxu1 %vm297_vm1, %v5456_v56  ;;  %7081 = vmatmul.mubr.msk.f32.vlgmr.msra.gmra.mrb[0].mxu0 %vm297_vm1, %v5873_v57  ;;  %v8222_v56 = vld [vmem:[%s7877_s27 + $0x10c] sm:$0xff]  ;;  %v204_v57 = vld [vmem:[%s7877_s27 + $0x40] sm:$0xff] }
  0x45   : > { %7153 = vmatpush3.msk.msra.mxu0 %vm442_vm0, %v7892_v10  ;;  %6749 = vmatprep.mubr.msk.f32.mxu1 %vm297_vm1, %v5457_v58  ;;  %v5464_v10 = vld [vmem:[%s7877_s27 + $0x109] sm:$0xff]  ;;  %v8226_v58 = vld [vmem:[%s7877_s27 + $0x114] sm:$0xff] }
  0x46   : > { %7083 = vmatprep.mubr.msk.f32.mxu0 %vm297_vm1, %v7999_v59  ;;  %7226 = vmatprep.subr.msk.mxu0 %vm442_vm0, %v8004_v60 }
  0x48   : > { %6750 = vmatmul.mubr.msk.f32.gmra.mrb[26].mxu1 %vm297_vm1, %v5458_v61  ;;  %7084 = vmatmul.mubr.msk.f32.gmra.mrb[2].mxu0 %vm297_vm1, %v8013_v62  ;;  %v205_v61 = vld [vmem:[%s7877_s27 + $0x48] sm:$0xff] }
  0x49   : > { %6752 = vmatprep.mubr.msk.f32.mxu1 %vm297_vm1, %v5459_v63  ;;  %7086 = vmatprep.mubr.msk.f32.mxu0 %vm297_vm1, %v8019_v0  ;;  %v8236_v63 = vld [vmem:[%s7877_s27 + $0x11c] sm:$0xff] }
  0x4c   : > { %6753 = vmatmul.mubr.msk.f32.gmra.mrb[28].mxu1 %vm297_vm1, %v5460_v2  ;;  %7087 = vmatmul.mubr.msk.f32.gmra.mrb[4].mxu0 %vm297_vm1, %v8031_v3  ;;  %v206_v2 = vld [vmem:[%s7877_s27 + $0x50] sm:$0xff] }
  0x4d   : > { %6755 = vmatprep.mubr.msk.f32.mxu1 %vm297_vm1, %v5461_v4  ;;  %7089 = vmatprep.mubr.msk.f32.mxu0 %vm297_vm1, %v8035_v5  ;;  %v8240_v4 = vld [vmem:[%s7877_s27 + $0x124] sm:$0xff] }
  0x50   : > { %6756 = vmatmul.mubr.msk.f32.gmra.mrb[30].mxu1 %vm297_vm1, %v5462_v6  ;;  %7090 = vmatmul.mubr.msk.f32.gmra.mrb[6].mxu0 %vm297_vm1, %v8045_v7  ;;  %v207_v6 = vld [vmem:[%s7877_s27 + $0x58] sm:$0xff] }
  0x51   : > { %6758 = vmatprep.mubr.msk.f32.mxu1 %vm297_vm1, %v5463_v8  ;;  %7092 = vmatprep.mubr.msk.f32.mxu0 %vm297_vm1, %v8049_v9  ;;  %v8250_v8 = vld [vmem:[%s7877_s27 + $0x12c] sm:$0xff] }
  0x54   : > { %6759 = vmatmul.mubr.msk.f32.gmra.mrb[32].mxu1 %vm297_vm1, %v5464_v10  ;;  %7093 = vmatmul.mubr.msk.f32.gmra.mrb[8].mxu0 %vm297_vm1, %v8059_v12  ;;  %v208_v10 = vld [vmem:[%s7877_s27 + $0x60] sm:$0xff] }
  0x55   : > { %6761 = vmatprep.mubr.msk.f32.mxu1 %vm297_vm1, %v5465_v13  ;;  %7095 = vmatprep.mubr.msk.f32.mxu0 %vm297_vm1, %v8063_v14  ;;  %v8254_v13 = vld [vmem:[%s7877_s27 + $0x134] sm:$0xff] }
  0x58   : > { %6762 = vmatmul.mubr.msk.f32.gmra.mrb[34].mxu1 %vm297_vm1, %v5466_v15  ;;  %7096 = vmatmul.mubr.msk.f32.gmra.mrb[10].mxu0 %vm297_vm1, %v8073_v16  ;;  %v209_v15 = vld [vmem:[%s7877_s27 + $0x68] sm:$0xff] }
  0x59   : > { %6764 = vmatprep.mubr.msk.f32.mxu1 %vm297_vm1, %v5467_v17  ;;  %7098 = vmatprep.mubr.msk.f32.mxu0 %vm297_vm1, %v8077_v18  ;;  %v8264_v17 = vld [vmem:[%s7877_s27 + $0x13c] sm:$0xff] }
  0x5c   : > { %6765 = vmatmul.mubr.msk.f32.gmra.mrb[36].mxu1 %vm297_vm1, %v5468_v19  ;;  %7099 = vmatmul.mubr.msk.f32.gmra.mrb[12].mxu0 %vm297_vm1, %v8087_v20  ;;  %v210_v19 = vld [vmem:[%s7877_s27 + $0x70] sm:$0xff] }
  0x5d   : > { %6767 = vmatprep.mubr.msk.f32.mxu1 %vm297_vm1, %v5469_v21  ;;  %7101 = vmatprep.mubr.msk.f32.mxu0 %vm297_vm1, %v8091_v22  ;;  %v8268_v21 = vld [vmem:[%s7877_s27 + $0x144] sm:$0xff] }
  0x60   : > { %6768 = vmatmul.mubr.msk.f32.gmra.mrb[38].mxu1 %vm297_vm1, %v5470_v23  ;;  %7102 = vmatmul.mubr.msk.f32.gmra.mrb[14].mxu0 %vm297_vm1, %v8101_v24  ;;  %v211_v23 = vld [vmem:[%s7877_s27 + $0x78] sm:$0xff] }
  0x61   : > { %6770 = vmatprep.mubr.msk.f32.mxu1 %vm297_vm1, %v5471_v25  ;;  %7104 = vmatprep.mubr.msk.f32.mxu0 %vm297_vm1, %v8105_v26  ;;  %v8278_v25 = vld [vmem:[%s7877_s27 + $0x14c] sm:$0xff] }
  0x64   : > { %6771 = vmatmul.mubr.msk.f32.gmra.mrb[40].mxu1 %vm297_vm1, %v5472_v27  ;;  %7105 = vmatmul.mubr.msk.f32.gmra.mrb[16].mxu0 %vm297_vm1, %v8115_v28  ;;  %v212_v27 = vld [vmem:[%s7877_s27 + $0x80] sm:$0xff] }
  0x65   : > { %6773 = vmatprep.mubr.msk.f32.mxu1 %vm297_vm1, %v5473_v29  ;;  %7107 = vmatprep.mubr.msk.f32.mxu0 %vm297_vm1, %v8119_v30  ;;  %v8282_v29 = vld [vmem:[%s7877_s27 + $0x154] sm:$0xff] }
  0x68   : > { %6774 = vmatmul.mubr.msk.f32.gmra.mrb[42].mxu1 %vm297_vm1, %v5474_v31  ;;  %7108 = vmatmul.mubr.msk.f32.gmra.mrb[18].mxu0 %vm297_vm1, %v8129_v32  ;;  %v213_v31 = vld [vmem:[%s7877_s27 + $0x88] sm:$0xff] }
  0x69   : > { %6776 = vmatprep.mubr.msk.f32.mxu1 %vm297_vm1, %v5475_v33  ;;  %7110 = vmatprep.mubr.msk.f32.mxu0 %vm297_vm1, %v8133_v34  ;;  %v8292_v33 = vld [vmem:[%s7877_s27 + $0x15c] sm:$0xff] }
  0x6c   : > { %6777 = vmatmul.mubr.msk.f32.gmra.mrb[44].mxu1 %vm297_vm1, %v5476_v35  ;;  %7111 = vmatmul.mubr.msk.f32.gmra.mrb[20].mxu0 %vm297_vm1, %v8143_v36  ;;  %v214_v35 = vld [vmem:[%s7877_s27 + $0x90] sm:$0xff] }
  0x6d   : > { %6779 = vmatprep.mubr.msk.f32.mxu1 %vm297_vm1, %v5477_v37  ;;  %7113 = vmatprep.mubr.msk.f32.mxu0 %vm297_vm1, %v8147_v38  ;;  %v8296_v37 = vld [vmem:[%s7877_s27 + $0x164] sm:$0xff] }
  0x70   : > { %6780 = vmatmul.mubr.msk.f32.gmra.mrb[46].mxu1 %vm297_vm1, %v5478_v39  ;;  %7114 = vmatmul.mubr.msk.f32.gmra.mrb[22].mxu0 %vm297_vm1, %v8157_v40  ;;  %v215_v39 = vld [vmem:[%s7877_s27 + $0x98] sm:$0xff] }
  0x71   : > { %6784 = vmatprep.mubr.msk.f32.mxu1 %vm297_vm1, %v196_v41  ;;  %7116 = vmatprep.mubr.msk.f32.mxu0 %vm297_vm1, %v8161_v42  ;;  %v8306_v41 = vld [vmem:[%s7877_s27 + $0x16c] sm:$0xff] }
  0x74   : > { %6785 = vmatmul.mubr.msk.f32.vlgmr.msra.gmra.mrb[0].mxu1 %vm297_vm1, %v197_v43  ;;  %7117 = vmatmul.mubr.msk.f32.gmra.mrb[24].mxu0 %vm297_vm1, %v8171_v44  ;;  %v216_v43 = vld [vmem:[%s7877_s27 + $0xa0] sm:$0xff] }
  0x75   : > { %6857 = vmatpush3.msk.msra.mxu1 %vm442_vm0, %v7897_v11  ;;  %6787 = vmatprep.mubr.msk.f32.mxu1 %vm297_vm1, %v198_v45  ;;  %v201_v11 = vld [vmem:[%s7877_s27 + $0x28] sm:$0xff]  ;;  %v8310_v45 = vld [vmem:[%s7877_s27 + $0x174] sm:$0xff] }
  0x76   : > { %7119 = vmatprep.mubr.msk.f32.mxu0 %vm297_vm1, %v8175_v46  ;;  %6930 = vmatprep.subr.msk.mxu1 %vm442_vm0, %v8180_v47 }
  0x78   : > { %6788 = vmatmul.mubr.msk.f32.gmra.mrb[2].mxu1 %vm297_vm1, %v199_v48  ;;  %7120 = vmatmul.mubr.msk.f32.gmra.mrb[26].mxu0 %vm297_vm1, %v8190_v49  ;;  %v217_v48 = vld [vmem:[%s7877_s27 + $0xa8] sm:$0xff] }
  0x79   : > { %6790 = vmatprep.mubr.msk.f32.mxu1 %vm297_vm1, %v200_v50  ;;  %7122 = vmatprep.mubr.msk.f32.mxu0 %vm297_vm1, %v8196_v51  ;;  %v8320_v50 = vld [vmem:[%s7877_s27 + $0x17c] sm:$0xff] }
  0x7c   : > { %6791 = vmatmul.mubr.msk.f32.gmra.mrb[4].mxu1 %vm297_vm1, %v201_v11  ;;  %7123 = vmatmul.mubr.msk.f32.gmra.mrb[28].mxu0 %vm297_vm1, %v8208_v52  ;;  %v218_v11 = vld [vmem:[%s7877_s27 + $0xb0] sm:$0xff] }
  0x7d   : > { %6793 = vmatprep.mubr.msk.f32.mxu1 %vm297_vm1, %v202_v53  ;;  %7125 = vmatprep.mubr.msk.f32.mxu0 %vm297_vm1, %v8212_v54  ;;  %v8324_v53 = vld [vmem:[%s7877_s27 + $0x184] sm:$0xff] }
  0x80   : > { %6794 = vmatmul.mubr.msk.f32.gmra.mrb[6].mxu1 %vm297_vm1, %v203_v55  ;;  %7126 = vmatmul.mubr.msk.f32.gmra.mrb[30].mxu0 %vm297_vm1, %v8222_v56  ;;  %v219_v55 = vld [vmem:[%s7877_s27 + $0xb8] sm:$0xff] }
  0x81   : > { %6796 = vmatprep.mubr.msk.f32.mxu1 %vm297_vm1, %v204_v57  ;;  %7128 = vmatprep.mubr.msk.f32.mxu0 %vm297_vm1, %v8226_v58  ;;  %v8334_v57 = vld [vmem:[%s7877_s27 + $0x18c] sm:$0xff] }
  0x84   : > { %6797 = vmatmul.mubr.msk.f32.gmra.mrb[8].mxu1 %vm297_vm1, %v205_v61  ;;  %7129 = vmatmul.mubr.msk.f32.gmra.mrb[32].mxu0 %vm297_vm1, %v8236_v63  ;;  %v220_v61 = vld [vmem:[%s7877_s27 + $0xc0] sm:$0xff] }
  0x85   : > { %6799 = vmatprep.mubr.msk.f32.mxu1 %vm297_vm1, %v206_v2  ;;  %7131 = vmatprep.mubr.msk.f32.mxu0 %vm297_vm1, %v8240_v4  ;;  %v221_v2 = vld [vmem:[%s7877_s27 + $0xc8] sm:$0xff] }
  0x88   : > { %6800 = vmatmul.mubr.msk.f32.gmra.mrb[10].mxu1 %vm297_vm1, %v207_v6  ;;  %7132 = vmatmul.mubr.msk.f32.gmra.mrb[34].mxu0 %vm297_vm1, %v8250_v8  ;;  %v222_v6 = vld [vmem:[%s7877_s27 + $0xd0] sm:$0xff] }
  0x89   : > { %6802 = vmatprep.mubr.msk.f32.mxu1 %vm297_vm1, %v208_v10  ;;  %7134 = vmatprep.mubr.msk.f32.mxu0 %vm297_vm1, %v8254_v13  ;;  %v8348_v10 = vld [vmem:[%s9193_s1 + $0x20] sm:$0xf] }
  0x8c   : > { %6803 = vmatmul.mubr.msk.f32.gmra.mrb[12].mxu1 %vm297_vm1, %v209_v15  ;;  %7135 = vmatmul.mubr.msk.f32.gmra.mrb[36].mxu0 %vm297_vm1, %v8264_v17  ;;  %v224_v15 = vld [vmem:[%s7877_s27 + $0xe0] sm:$0xff] }
  0x8d   : > { %6805 = vmatprep.mubr.msk.f32.mxu1 %vm297_vm1, %v210_v19  ;;  %7137 = vmatprep.mubr.msk.f32.mxu0 %vm297_vm1, %v8268_v21  ;;  %v8576_v19 = vld [vmem:[%s7877_s27 + $0x9a] sm:$0xff] }
  0x90   : > { %6806 = vmatmul.mubr.msk.f32.gmra.mrb[14].mxu1 %vm297_vm1, %v211_v23  ;;  %7138 = vmatmul.mubr.msk.f32.gmra.mrb[38].mxu0 %vm297_vm1, %v8278_v25  ;;  %v8590_v23 = vld [vmem:[%s7877_s27 + $0xaa] sm:$0xff] }
  0x91   : > { %6808 = vmatprep.mubr.msk.f32.mxu1 %vm297_vm1, %v212_v27  ;;  %7140 = vmatprep.mubr.msk.f32.mxu0 %vm297_vm1, %v8282_v29  ;;  %v6016_v27 = vld [vmem:[%s7877_s27 + $0x194] sm:$0xff] }
  0x94   : > { %6809 = vmatmul.mubr.msk.f32.gmra.mrb[16].mxu1 %vm297_vm1, %v213_v31  ;;  %7141 = vmatmul.mubr.msk.f32.gmra.mrb[40].mxu0 %vm297_vm1, %v8292_v33  ;;  %v6017_v31 = vld [vmem:[%s7877_s27 + $0x19c] sm:$0xff] }
  0x95   : > { %6811 = vmatprep.mubr.msk.f32.mxu1 %vm297_vm1, %v214_v35  ;;  %7143 = vmatprep.mubr.msk.f32.mxu0 %vm297_vm1, %v8296_v37  ;;  %v6068_v35 = vld [vmem:[%s7877_s27 + $0x25] sm:$0xff] }
  0x98   : > { %6812 = vmatmul.mubr.msk.f32.gmra.mrb[18].mxu1 %vm297_vm1, %v215_v39  ;;  %7144 = vmatmul.mubr.msk.f32.gmra.mrb[42].mxu0 %vm297_vm1, %v8306_v41  ;;  %v6069_v39 = vld [vmem:[%s7877_s27 + $0x2d] sm:$0xff] }
  0x99   : > { %6814 = vmatprep.mubr.msk.f32.mxu1 %vm297_vm1, %v216_v43  ;;  %7146 = vmatprep.mubr.msk.f32.mxu0 %vm297_vm1, %v8310_v45  ;;  %v6070_v43 = vld [vmem:[%s7877_s27 + $0x35] sm:$0xff] }
  0x9c   : > { %6815 = vmatmul.mubr.msk.f32.gmra.mrb[20].mxu1 %vm297_vm1, %v217_v48  ;;  %7147 = vmatmul.mubr.msk.f32.gmra.mrb[44].mxu0 %vm297_vm1, %v8320_v50  ;;  %v6071_v48 = vld [vmem:[%s7877_s27 + $0x3d] sm:$0xff] }
  0x9d   : > { %6817 = vmatprep.mubr.msk.f32.mxu1 %vm297_vm1, %v218_v11  ;;  %7149 = vmatprep.mubr.msk.f32.mxu0 %vm297_vm1, %v8324_v53  ;;  %v6072_v11 = vld [vmem:[%s7877_s27 + $0x45] sm:$0xff] }
  0xa0   : > { %6818 = vmatmul.mubr.msk.f32.gmra.mrb[22].mxu1 %vm297_vm1, %v219_v55  ;;  %7150 = vmatmul.mubr.msk.f32.gmra.mrb[46].mxu0 %vm297_vm1, %v8334_v57  ;;  %v6073_v55 = vld [vmem:[%s7877_s27 + $0x4d] sm:$0xff] }
  0xa1   : > { %6820 = vmatprep.mubr.msk.f32.mxu1 %vm297_vm1, %v220_v61  ;;  %7154 = vmatprep.mubr.msk.f32.mxu0 %vm297_vm1, %v7999_v59  ;;  %v223_v59 = vld [vmem:[%s7877_s27 + $0xd8] sm:$0xff] }
  0xa2   : > { %v6074_v61 = vld [vmem:[%s7877_s27 + $0x55] sm:$0xff] }
  0xa4   : > { %6821 = vmatmul.mubr.msk.f32.gmra.mrb[24].mxu1 %vm297_vm1, %v221_v2  ;;  %7155 = vmatmul.mubr.msk.f32.vlgmr.msra.gmra.mrb[0].mxu0 %vm297_vm1, %v8013_v62  ;;  %v226_v62 = vld [vmem:[%s7877_s27 + $0xf0] sm:$0xff]  ;;  %v8662_v2 = vld [vmem:[%s7877_s27 + $0xfa] sm:$0xff] }
  0xa5   : > { %7227 = vmatpush3.msk.msra.mxu0 %vm442_vm0, %v8004_v60  ;;  %6823 = vmatprep.mubr.msk.f32.mxu1 %vm297_vm1, %v222_v6  ;;  %v225_v60 = vld [vmem:[%s7877_s27 + $0xe8] sm:$0xff]  ;;  %v6075_v6 = vld [vmem:[%s7877_s27 + $0x5d] sm:$0xff] }
  0xa6   : > { %7157 = vmatprep.mubr.msk.f32.mxu0 %vm297_vm1, %v8019_v0  ;;  %7300 = vmatprep.subr.msk.mxu0 %vm442_vm0, %v8348_v10  ;;  %v227_v0 = vld [vmem:[%s7877_s27 + $0xf8] sm:$0xff] }
  0xa8   : > { %6824 = vmatmul.mubr.msk.f32.gmra.mrb[26].mxu1 %vm297_vm1, %v223_v59  ;;  %7158 = vmatmul.mubr.msk.f32.gmra.mrb[2].mxu0 %vm297_vm1, %v8031_v3  ;;  %v228_v3 = vld [vmem:[%s7877_s27 + $0x100] sm:$0xff] }
  0xa9   : > { %6826 = vmatprep.mubr.msk.f32.mxu1 %vm297_vm1, %v224_v15  ;;  %7160 = vmatprep.mubr.msk.f32.mxu0 %vm297_vm1, %v8035_v5  ;;  %v229_v5 = vld [vmem:[%s7877_s27 + $0x108] sm:$0xff] }
  0xaa   : > { %v6076_v59 = vld [vmem:[%s7877_s27 + $0x65] sm:$0xff] }
  0xab   : > { %v8676_v15 = vld [vmem:[%s7877_s27 + $0x10a] sm:$0xff] }
  0xac   : > { %6827 = vmatmul.mubr.msk.f32.gmra.mrb[28].mxu1 %vm297_vm1, %v225_v60  ;;  %7161 = vmatmul.mubr.msk.f32.gmra.mrb[4].mxu0 %vm297_vm1, %v8045_v7  ;;  %v230_v7 = vld [vmem:[%s7877_s27 + $0x110] sm:$0xff] }
  0xad   : > { %6829 = vmatprep.mubr.msk.f32.mxu1 %vm297_vm1, %v226_v62  ;;  %7163 = vmatprep.mubr.msk.f32.mxu0 %vm297_vm1, %v8049_v9  ;;  %v231_v9 = vld [vmem:[%s7877_s27 + $0x118] sm:$0xff]  ;;  %v6077_v60 = vld [vmem:[%s7877_s27 + $0x6d] sm:$0xff] }
  0xae   : > { %v8680_v62 = vld [vmem:[%s7877_s27 + $0x112] sm:$0xff] }
  0xb0   : > { %6830 = vmatmul.mubr.msk.f32.gmra.mrb[30].mxu1 %vm297_vm1, %v227_v0  ;;  %7164 = vmatmul.mubr.msk.f32.gmra.mrb[6].mxu0 %vm297_vm1, %v8059_v12  ;;  %v232_v12 = vld [vmem:[%s7877_s27 + $0x120] sm:$0xff]  ;;  %v6078_v0 = vld [vmem:[%s7877_s27 + $0x75] sm:$0xff] }
  0xb1   : > { %6832 = vmatprep.mubr.msk.f32.mxu1 %vm297_vm1, %v228_v3  ;;  %7166 = vmatprep.mubr.msk.f32.mxu0 %vm297_vm1, %v8063_v14  ;;  %v233_v14 = vld [vmem:[%s7877_s27 + $0x128] sm:$0xff]  ;;  %v8690_v3 = vld [vmem:[%s7877_s27 + $0x11a] sm:$0xff] }
  0xb4   : > { %6833 = vmatmul.mubr.msk.f32.gmra.mrb[32].mxu1 %vm297_vm1, %v229_v5  ;;  %7167 = vmatmul.mubr.msk.f32.gmra.mrb[8].mxu0 %vm297_vm1, %v8073_v16  ;;  %v234_v16 = vld [vmem:[%s7877_s27 + $0x130] sm:$0xff]  ;;  %v6079_v5 = vld [vmem:[%s7877_s27 + $0x7d] sm:$0xff] }
  0xb5   : > { %6835 = vmatprep.mubr.msk.f32.mxu1 %vm297_vm1, %v230_v7  ;;  %7169 = vmatprep.mubr.msk.f32.mxu0 %vm297_vm1, %v8077_v18  ;;  %v235_v18 = vld [vmem:[%s7877_s27 + $0x138] sm:$0xff]  ;;  %v8694_v7 = vld [vmem:[%s7877_s27 + $0x122] sm:$0xff] }
  0xb8   : > { %6836 = vmatmul.mubr.msk.f32.gmra.mrb[34].mxu1 %vm297_vm1, %v231_v9  ;;  %7170 = vmatmul.mubr.msk.f32.gmra.mrb[10].mxu0 %vm297_vm1, %v8087_v20  ;;  %v236_v20 = vld [vmem:[%s7877_s27 + $0x140] sm:$0xff] }
  0xb9   : > { %6838 = vmatprep.mubr.msk.f32.mxu1 %vm297_vm1, %v232_v12  ;;  %7172 = vmatprep.mubr.msk.f32.mxu0 %vm297_vm1, %v8091_v22  ;;  %v237_v22 = vld [vmem:[%s7877_s27 + $0x148] sm:$0xff] }
  0xba   : > { %v6080_v9 = vld [vmem:[%s7877_s27 + $0x85] sm:$0xff] }
  0xbb   : > { %v8704_v12 = vld [vmem:[%s7877_s27 + $0x12a] sm:$0xff] }
  0xbc   : > { %6839 = vmatmul.mubr.msk.f32.gmra.mrb[36].mxu1 %vm297_vm1, %v233_v14  ;;  %7173 = vmatmul.mubr.msk.f32.gmra.mrb[12].mxu0 %vm297_vm1, %v8101_v24  ;;  %v238_v24 = vld [vmem:[%s7877_s27 + $0x150] sm:$0xff] }
  0xbd   : > { %6841 = vmatprep.mubr.msk.f32.mxu1 %vm297_vm1, %v234_v16  ;;  %7175 = vmatprep.mubr.msk.f32.mxu0 %vm297_vm1, %v8105_v26  ;;  %v239_v26 = vld [vmem:[%s7877_s27 + $0x158] sm:$0xff]  ;;  %v6081_v14 = vld [vmem:[%s7877_s27 + $0x8d] sm:$0xff] }
  0xbe   : > { %v8708_v16 = vld [vmem:[%s7877_s27 + $0x132] sm:$0xff] }
  0xc0   : > { %6842 = vmatmul.mubr.msk.f32.gmra.mrb[38].mxu1 %vm297_vm1, %v235_v18  ;;  %7176 = vmatmul.mubr.msk.f32.gmra.mrb[14].mxu0 %vm297_vm1, %v8115_v28  ;;  %v240_v28 = vld [vmem:[%s7877_s27 + $0x160] sm:$0xff]  ;;  %v6082_v18 = vld [vmem:[%s7877_s27 + $0x95] sm:$0xff] }
  0xc1   : > { %6844 = vmatprep.mubr.msk.f32.mxu1 %vm297_vm1, %v236_v20  ;;  %7178 = vmatprep.mubr.msk.f32.mxu0 %vm297_vm1, %v8119_v30  ;;  %v241_v30 = vld [vmem:[%s7877_s27 + $0x168] sm:$0xff]  ;;  %v8718_v20 = vld [vmem:[%s7877_s27 + $0x13a] sm:$0xff] }
  0xc4   : > { %6845 = vmatmul.mubr.msk.f32.gmra.mrb[40].mxu1 %vm297_vm1, %v237_v22  ;;  %7179 = vmatmul.mubr.msk.f32.gmra.mrb[16].mxu0 %vm297_vm1, %v8129_v32  ;;  %v242_v32 = vld [vmem:[%s7877_s27 + $0x170] sm:$0xff]  ;;  %v6083_v22 = vld [vmem:[%s7877_s27 + $0x9d] sm:$0xff] }
  0xc5   : > { %6847 = vmatprep.mubr.msk.f32.mxu1 %vm297_vm1, %v238_v24  ;;  %7181 = vmatprep.mubr.msk.f32.mxu0 %vm297_vm1, %v8133_v34  ;;  %v243_v34 = vld [vmem:[%s7877_s27 + $0x178] sm:$0xff]  ;;  %v8722_v24 = vld [vmem:[%s7877_s27 + $0x142] sm:$0xff] }
  0xc8   : > { %6848 = vmatmul.mubr.msk.f32.gmra.mrb[42].mxu1 %vm297_vm1, %v239_v26  ;;  %7182 = vmatmul.mubr.msk.f32.gmra.mrb[18].mxu0 %vm297_vm1, %v8143_v36  ;;  %v5578_v36 = vld [vmem:[%s7877_s27 + $0x2] sm:$0xff] }
  0xc9   : > { %6850 = vmatprep.mubr.msk.f32.mxu1 %vm297_vm1, %v240_v28  ;;  %7184 = vmatprep.mubr.msk.f32.mxu0 %vm297_vm1, %v8147_v38  ;;  %v5579_v38 = vld [vmem:[%s7877_s27 + $0xa] sm:$0xff] }
  0xca   : > { %v6084_v26 = vld [vmem:[%s7877_s27 + $0xa5] sm:$0xff] }
  0xcb   : > { %v8732_v28 = vld [vmem:[%s7877_s27 + $0x14a] sm:$0xff] }
  0xcc   : > { %6851 = vmatmul.mubr.msk.f32.gmra.mrb[44].mxu1 %vm297_vm1, %v241_v30  ;;  %7185 = vmatmul.mubr.msk.f32.gmra.mrb[20].mxu0 %vm297_vm1, %v8157_v40  ;;  %v8450_v40 = vld [vmem:[%s7877_s27 + $0x12] sm:$0xff] }
  0xcd   : > { %6853 = vmatprep.mubr.msk.f32.mxu1 %vm297_vm1, %v242_v32  ;;  %7187 = vmatprep.mubr.msk.f32.mxu0 %vm297_vm1, %v8161_v42  ;;  %v8460_v42 = vld [vmem:[%s7877_s27 + $0x1a] sm:$0xff]  ;;  %v6085_v30 = vld [vmem:[%s7877_s27 + $0xad] sm:$0xff] }
  0xce   : > { %v8736_v32 = vld [vmem:[%s7877_s27 + $0x152] sm:$0xff] }
  0xd0   : > { %6854 = vmatmul.mubr.msk.f32.gmra.mrb[46].mxu1 %vm297_vm1, %v243_v34  ;;  %7188 = vmatmul.mubr.msk.f32.gmra.mrb[22].mxu0 %vm297_vm1, %v8171_v44  ;;  %v8465_v44 = vld [vmem:[%s7877_s27 + $0x22] sm:$0xff]  ;;  %v6086_v34 = vld [vmem:[%s7877_s27 + $0xb5] sm:$0xff] }
  0xd1   : > { %6858 = vmatprep.mubr.msk.f32.mxu1 %vm297_vm1, %v5578_v36  ;;  %7190 = vmatprep.mubr.msk.f32.mxu0 %vm297_vm1, %v8175_v46  ;;  %v8478_v46 = vld [vmem:[%s7877_s27 + $0x2a] sm:$0xff]  ;;  %v8746_v36 = vld [vmem:[%s7877_s27 + $0x15a] sm:$0xff] }
  0xd4   : > { %6859 = vmatmul.mubr.msk.f32.vlgmr.msra.gmra.mrb[0].mxu1 %vm297_vm1, %v5579_v38  ;;  %7191 = vmatmul.mubr.msk.f32.gmra.mrb[24].mxu0 %vm297_vm1, %v8190_v49  ;;  %v8495_v49 = vld [vmem:[%s7877_s27 + $0x42] sm:$0xff] }
  0xd5   : > { %6931 = vmatpush3.msk.msra.mxu1 %vm442_vm0, %v8180_v47  ;;  %6861 = vmatprep.mubr.msk.f32.mxu1 %vm297_vm1, %v8450_v40  ;;  %v8481_v47 = vld [vmem:[%s7877_s27 + $0x32] sm:$0xff]  ;;  %v6087_v38 = vld [vmem:[%s7877_s27 + $0xbd] sm:$0xff] }
  0xd6   : > { %7193 = vmatprep.mubr.msk.f32.mxu0 %vm297_vm1, %v8196_v51  ;;  %7374 = vmatprep.subr.msk.mxu1 %vm442_vm0, %v7855_v1  ;;  %v8492_v1 = vld [vmem:[%s7877_s27 + $0x3a] sm:$0xff]  ;;  %v8506_v51 = vld [vmem:[%s7877_s27 + $0x4a] sm:$0xff] }
  0xd8   : > { %6862 = vmatmul.mubr.msk.f32.gmra.mrb[2].mxu1 %vm297_vm1, %v8460_v42  ;;  %7194 = vmatmul.mubr.msk.f32.gmra.mrb[26].mxu0 %vm297_vm1, %v8208_v52  ;;  %v8509_v52 = vld [vmem:[%s7877_s27 + $0x52] sm:$0xff] }
  0xd9   : > { %6864 = vmatprep.mubr.msk.f32.mxu1 %vm297_vm1, %v8465_v44  ;;  %7196 = vmatprep.mubr.msk.f32.mxu0 %vm297_vm1, %v8212_v54  ;;  %v8520_v54 = vld [vmem:[%s7877_s27 + $0x5a] sm:$0xff] }
  0xdc   : > { %6865 = vmatmul.mubr.msk.f32.gmra.mrb[4].mxu1 %vm297_vm1, %v8478_v46  ;;  %7197 = vmatmul.mubr.msk.f32.gmra.mrb[28].mxu0 %vm297_vm1, %v8222_v56  ;;  %v8523_v56 = vld [vmem:[%s7877_s27 + $0x62] sm:$0xff] }
  0xdd   : > { %6867 = vmatprep.mubr.msk.f32.mxu1 %vm297_vm1, %v8481_v47  ;;  %7199 = vmatprep.mubr.msk.f32.mxu0 %vm297_vm1, %v8226_v58  ;;  %v8534_v58 = vld [vmem:[%s7877_s27 + $0x6a] sm:$0xff] }
  0xe0   : > { %6868 = vmatmul.mubr.msk.f32.gmra.mrb[6].mxu1 %vm297_vm1, %v8492_v1  ;;  %7200 = vmatmul.mubr.msk.f32.gmra.mrb[30].mxu0 %vm297_vm1, %v8236_v63  ;;  %v8537_v63 = vld [vmem:[%s7877_s27 + $0x72] sm:$0xff] }
  0xe1   : > { %6870 = vmatprep.mubr.msk.f32.mxu1 %vm297_vm1, %v8495_v49  ;;  %7202 = vmatprep.mubr.msk.f32.mxu0 %vm297_vm1, %v8240_v4  ;;  %v8548_v4 = vld [vmem:[%s7877_s27 + $0x7a] sm:$0xff] }
  0xe4   : > { %6871 = vmatmul.mubr.msk.f32.gmra.mrb[8].mxu1 %vm297_vm1, %v8506_v51  ;;  %7203 = vmatmul.mubr.msk.f32.gmra.mrb[32].mxu0 %vm297_vm1, %v8250_v8  ;;  %v8551_v8 = vld [vmem:[%s7877_s27 + $0x82] sm:$0xff] }
  0xe5   : > { %6873 = vmatprep.mubr.msk.f32.mxu1 %vm297_vm1, %v8509_v52  ;;  %7205 = vmatprep.mubr.msk.f32.mxu0 %vm297_vm1, %v8254_v13  ;;  %v8562_v13 = vld [vmem:[%s7877_s27 + $0x8a] sm:$0xff] }
  0xe8   : > { %6874 = vmatmul.mubr.msk.f32.gmra.mrb[10].mxu1 %vm297_vm1, %v8520_v54  ;;  %7206 = vmatmul.mubr.msk.f32.gmra.mrb[34].mxu0 %vm297_vm1, %v8264_v17  ;;  %v8565_v17 = vld [vmem:[%s7877_s27 + $0x92] sm:$0xff] }
  0xe9   : > { %6876 = vmatprep.mubr.msk.f32.mxu1 %vm297_vm1, %v8523_v56  ;;  %7208 = vmatprep.mubr.msk.f32.mxu0 %vm297_vm1, %v8268_v21  ;;  %v8579_v21 = vld [vmem:[%s7877_s27 + $0xa2] sm:$0xff] }
  0xec   : > { %6877 = vmatmul.mubr.msk.f32.gmra.mrb[12].mxu1 %vm297_vm1, %v8534_v58  ;;  %7209 = vmatmul.mubr.msk.f32.gmra.mrb[36].mxu0 %vm297_vm1, %v8278_v25  ;;  %v8593_v25 = vld [vmem:[%s7877_s27 + $0xb2] sm:$0xff] }
  0xed   : > { %6879 = vmatprep.mubr.msk.f32.mxu1 %vm297_vm1, %v8537_v63  ;;  %7211 = vmatprep.mubr.msk.f32.mxu0 %vm297_vm1, %v8282_v29  ;;  %v8604_v29 = vld [vmem:[%s7877_s27 + $0xba] sm:$0xff] }
  0xf0   : > { %6880 = vmatmul.mubr.msk.f32.gmra.mrb[14].mxu1 %vm297_vm1, %v8548_v4  ;;  %7212 = vmatmul.mubr.msk.f32.gmra.mrb[38].mxu0 %vm297_vm1, %v8292_v33  ;;  %v8608_v33 = vld [vmem:[%s7877_s27 + $0xc2] sm:$0xff] }
  0xf1   : > { %6882 = vmatprep.mubr.msk.f32.mxu1 %vm297_vm1, %v8551_v8  ;;  %7214 = vmatprep.mubr.msk.f32.mxu0 %vm297_vm1, %v8296_v37  ;;  %v8618_v37 = vld [vmem:[%s7877_s27 + $0xca] sm:$0xff] }
  0xf4   : > { %6883 = vmatmul.mubr.msk.f32.gmra.mrb[16].mxu1 %vm297_vm1, %v8562_v13  ;;  %7215 = vmatmul.mubr.msk.f32.gmra.mrb[40].mxu0 %vm297_vm1, %v8306_v41  ;;  %v8622_v41 = vld [vmem:[%s7877_s27 + $0xd2] sm:$0xff] }
  0xf5   : > { %6885 = vmatprep.mubr.msk.f32.mxu1 %vm297_vm1, %v8565_v17  ;;  %7217 = vmatprep.mubr.msk.f32.mxu0 %vm297_vm1, %v8310_v45  ;;  %v8633_v45 = vld [vmem:[%s7877_s27 + $0xda] sm:$0xff] }
  0xf8   : > { %6886 = vmatmul.mubr.msk.f32.gmra.mrb[18].mxu1 %vm297_vm1, %v8576_v19  ;;  %7218 = vmatmul.mubr.msk.f32.gmra.mrb[42].mxu0 %vm297_vm1, %v8320_v50  ;;  %v8638_v50 = vld [vmem:[%s7877_s27 + $0xe2] sm:$0xff] }
  0xf9   : > { %6888 = vmatprep.mubr.msk.f32.mxu1 %vm297_vm1, %v8579_v21  ;;  %7220 = vmatprep.mubr.msk.f32.mxu0 %vm297_vm1, %v8324_v53  ;;  %v8648_v53 = vld [vmem:[%s7877_s27 + $0xea] sm:$0xff] }
  0xfc   : > { %6889 = vmatmul.mubr.msk.f32.gmra.mrb[20].mxu1 %vm297_vm1, %v8590_v23  ;;  %7221 = vmatmul.mubr.msk.f32.gmra.mrb[44].mxu0 %vm297_vm1, %v8334_v57  ;;  %v8652_v57 = vld [vmem:[%s7877_s27 + $0xf2] sm:$0xff] }
  0xfd   : > { %6891 = vmatprep.mubr.msk.f32.mxu1 %vm297_vm1, %v8593_v25  ;;  %7223 = vmatprep.mubr.msk.f32.mxu0 %vm297_vm1, %v6016_v27  ;;  %v8750_v27 = vld [vmem:[%s7877_s27 + $0x162] sm:$0xff] }
 0x100   : > { %6892 = vmatmul.mubr.msk.f32.gmra.mrb[22].mxu1 %vm297_vm1, %v8604_v29  ;;  %7224 = vmatmul.mubr.msk.f32.gmra.mrb[46].mxu0 %vm297_vm1, %v6017_v31  ;;  %v6088_v31 = vld [vmem:[%s7877_s27 + $0xc5] sm:$0xff] }
 0x101   : > { %6894 = vmatprep.mubr.msk.f32.mxu1 %vm297_vm1, %v8608_v33  ;;  %7228 = vmatprep.mubr.msk.f32.mxu0 %vm297_vm1, %v6068_v35  ;;  %v8760_v35 = vld [vmem:[%s7877_s27 + $0x16a] sm:$0xff] }
 0x104   : > { %6895 = vmatmul.mubr.msk.f32.gmra.mrb[24].mxu1 %vm297_vm1, %v8618_v37  ;;  %7229 = vmatmul.mubr.msk.f32.vlgmr.msra.gmra.mrb[0].mxu0 %vm297_vm1, %v6069_v39  ;;  %v6089_v39 = vld [vmem:[%s7877_s27 + $0xcd] sm:$0xff] }
 0x105   : > { %7301 = vmatpush3.msk.msra.mxu0 %vm442_vm0, %v8348_v10  ;;  %6897 = vmatprep.mubr.msk.f32.mxu1 %vm297_vm1, %v8622_v41  ;;  %v8666_v10 = vld [vmem:[%s7877_s27 + $0x102] sm:$0xff] }
 0x106   : > { %7231 = vmatprep.mubr.msk.f32.mxu0 %vm297_vm1, %v6070_v43  ;;  %v8764_v43 = vld [vmem:[%s7877_s27 + $0x172] sm:$0xff] }
 0x108   : > { %6898 = vmatmul.mubr.msk.f32.gmra.mrb[26].mxu1 %vm297_vm1, %v8633_v45  ;;  %7232 = vmatmul.mubr.msk.f32.gmra.mrb[2].mxu0 %vm297_vm1, %v6071_v48  ;;  %v6090_v48 = vld [vmem:[%s7877_s27 + $0xd5] sm:$0xff] }
 0x109   : > { %6900 = vmatprep.mubr.msk.f32.mxu1 %vm297_vm1, %v8638_v50  ;;  %7234 = vmatprep.mubr.msk.f32.mxu0 %vm297_vm1, %v6072_v11  ;;  %v8774_v11 = vld [vmem:[%s7877_s27 + $0x17a] sm:$0xff] }
 0x10c   : > { %6901 = vmatmul.mubr.msk.f32.gmra.mrb[28].mxu1 %vm297_vm1, %v8648_v53  ;;  %7235 = vmatmul.mubr.msk.f32.gmra.mrb[4].mxu0 %vm297_vm1, %v6073_v55  ;;  %v6091_v55 = vld [vmem:[%s7877_s27 + $0xdd] sm:$0xff] }
 0x10d   : > { %6903 = vmatprep.mubr.msk.f32.mxu1 %vm297_vm1, %v8652_v57  ;;  %7237 = vmatprep.mubr.msk.f32.mxu0 %vm297_vm1, %v6074_v61  ;;  %v6092_v61 = vld [vmem:[%s7877_s27 + $0xe5] sm:$0xff] }
 0x110   : > { %6904 = vmatmul.mubr.msk.f32.gmra.mrb[30].mxu1 %vm297_vm1, %v8662_v2  ;;  %7238 = vmatmul.mubr.msk.f32.gmra.mrb[6].mxu0 %vm297_vm1, %v6075_v6  ;;  %v6093_v6 = vld [vmem:[%s7877_s27 + $0xed] sm:$0xff] }
 0x111   : > { %6906 = vmatprep.mubr.msk.f32.mxu1 %vm297_vm1, %v8666_v10  ;;  %7240 = vmatprep.mubr.msk.f32.mxu0 %vm297_vm1, %v6076_v59  ;;  %v6094_v59 = vld [vmem:[%s7877_s27 + $0xf5] sm:$0xff] }
 0x114   : > { %6907 = vmatmul.mubr.msk.f32.gmra.mrb[32].mxu1 %vm297_vm1, %v8676_v15  ;;  %7241 = vmatmul.mubr.msk.f32.gmra.mrb[8].mxu0 %vm297_vm1, %v6077_v60  ;;  %v7786_v60 = vld [vmem:[%s9193_s1 + $0x10] sm:$0xf] }
 0x115   : > { %6909 = vmatprep.mubr.msk.f32.mxu1 %vm297_vm1, %v8680_v62  ;;  %7243 = vmatprep.mubr.msk.f32.mxu0 %vm297_vm1, %v6078_v0  ;;  %v6096_v0 = vld [vmem:[%s7877_s27 + $0x105] sm:$0xff] }
 0x118   : > { %6910 = vmatmul.mubr.msk.f32.gmra.mrb[34].mxu1 %vm297_vm1, %v8690_v3  ;;  %7244 = vmatmul.mubr.msk.f32.gmra.mrb[10].mxu0 %vm297_vm1, %v6079_v5  ;;  %v6098_v5 = vld [vmem:[%s7877_s27 + $0x115] sm:$0xff] }
 0x119   : > { %6912 = vmatprep.mubr.msk.f32.mxu1 %vm297_vm1, %v8694_v7  ;;  %7246 = vmatprep.mubr.msk.f32.mxu0 %vm297_vm1, %v6080_v9  ;;  %v6182_v9 = vld [vmem:[%s7877_s27 + $0xa6] sm:$0xff] }
 0x11c   : > { %6913 = vmatmul.mubr.msk.f32.gmra.mrb[36].mxu1 %vm297_vm1, %v8704_v12  ;;  %7247 = vmatmul.mubr.msk.f32.gmra.mrb[12].mxu0 %vm297_vm1, %v6081_v14  ;;  %v6184_v14 = vld [vmem:[%s7877_s27 + $0xb6] sm:$0xff] }
 0x11d   : > { %6915 = vmatprep.mubr.msk.f32.mxu1 %vm297_vm1, %v8708_v16  ;;  %7249 = vmatprep.mubr.msk.f32.mxu0 %vm297_vm1, %v6082_v18  ;;  %v6186_v18 = vld [vmem:[%s7877_s27 + $0xc6] sm:$0xff] }
 0x120   : > { %6916 = vmatmul.mubr.msk.f32.gmra.mrb[38].mxu1 %vm297_vm1, %v8718_v20  ;;  %7250 = vmatmul.mubr.msk.f32.gmra.mrb[14].mxu0 %vm297_vm1, %v6083_v22  ;;  %v5722_v22 = vld [vmem:[%s7877_s27 + $0x182] sm:$0xff] }
 0x121   : > { %6918 = vmatprep.mubr.msk.f32.mxu1 %vm297_vm1, %v8722_v24  ;;  %7252 = vmatprep.mubr.msk.f32.mxu0 %vm297_vm1, %v6084_v26  ;;  %v5723_v26 = vld [vmem:[%s7877_s27 + $0x18a] sm:$0xff] }
 0x124   : > { %6919 = vmatmul.mubr.msk.f32.gmra.mrb[40].mxu1 %vm297_vm1, %v8732_v28  ;;  %7253 = vmatmul.mubr.msk.f32.gmra.mrb[16].mxu0 %vm297_vm1, %v6085_v30  ;;  %v5798_v30 = vld [vmem:[%s7877_s27 + $0xd3] sm:$0xff] }
 0x125   : > { %6921 = vmatprep.mubr.msk.f32.mxu1 %vm297_vm1, %v8736_v32  ;;  %7255 = vmatprep.mubr.msk.f32.mxu0 %vm297_vm1, %v6086_v34  ;;  %v5799_v34 = vld [vmem:[%s7877_s27 + $0xdb] sm:$0xff] }
 0x128   : > { %6922 = vmatmul.mubr.msk.f32.gmra.mrb[42].mxu1 %vm297_vm1, %v8746_v36  ;;  %7256 = vmatmul.mubr.msk.f32.gmra.mrb[18].mxu0 %vm297_vm1, %v6087_v38  ;;  %v5800_v38 = vld [vmem:[%s7877_s27 + $0xe3] sm:$0xff] }
 0x129   : > { %6924 = vmatprep.mubr.msk.f32.mxu1 %vm297_vm1, %v8750_v27  ;;  %7258 = vmatprep.mubr.msk.f32.mxu0 %vm297_vm1, %v6088_v31  ;;  %v5801_v31 = vld [vmem:[%s7877_s27 + $0xeb] sm:$0xff] }
 0x12c   : > { %6925 = vmatmul.mubr.msk.f32.gmra.mrb[44].mxu1 %vm297_vm1, %v8760_v35  ;;  %7259 = vmatmul.mubr.msk.f32.gmra.mrb[20].mxu0 %vm297_vm1, %v6089_v39  ;;  %v5802_v39 = vld [vmem:[%s7877_s27 + $0xf3] sm:$0xff] }
 0x12d   : > { %6927 = vmatprep.mubr.msk.f32.mxu1 %vm297_vm1, %v8764_v43  ;;  %7261 = vmatprep.mubr.msk.f32.mxu0 %vm297_vm1, %v6090_v48  ;;  %v5803_v48 = vld [vmem:[%s7877_s27 + $0xfb] sm:$0xff] }
 0x130   : > { %6928 = vmatmul.mubr.msk.f32.gmra.mrb[46].mxu1 %vm297_vm1, %v8774_v11  ;;  %7262 = vmatmul.mubr.msk.f32.gmra.mrb[22].mxu0 %vm297_vm1, %v6091_v55  ;;  %v5804_v55 = vld [vmem:[%s7877_s27 + $0x103] sm:$0xff] }
 0x131   : > { %6932 = vmatprep.mubr.msk.f32.mxu1 %vm297_vm1, %v8450_v40  ;;  %7264 = vmatprep.mubr.msk.f32.mxu0 %vm297_vm1, %v6092_v61  ;;  %v6095_v40 = vld [vmem:[%s7877_s27 + $0xfd] sm:$0xff] }
 0x132   : > { %v6196_v61 = vld [vmem:[%s7877_s27 + $0x116] sm:$0xff] }
 0x134   : > { %6933 = vmatmul.mubr.msk.f32.vlgmr.msra.gmra.mrb[0].mxu1 %vm297_vm1, %v8460_v42  ;;  %7265 = vmatmul.mubr.msk.f32.gmra.mrb[24].mxu0 %vm297_vm1, %v6093_v6  ;;  %v6097_v42 = vld [vmem:[%s7877_s27 + $0x10d] sm:$0xff] }
 0x135   : > { %7375 = vmatpush3.msk.msra.mxu1 %vm442_vm0, %v7786_v60  ;;  %6935 = vmatprep.mubr.msk.f32.mxu1 %vm297_vm1, %v8465_v44  ;;  %v6099_v44 = vld [vmem:[%s7877_s27 + $0x11d] sm:$0xff]  ;;  %v5805_v6 = vld [vmem:[%s7877_s27 + $0x10b] sm:$0xff]  ;;  %v5806_v60 = vld [vmem:[%s7877_s27 + $0x113] sm:$0xff] }
 0x136   : > { %7267 = vmatprep.mubr.msk.f32.mxu0 %vm297_vm1, %v6094_v59  ;;  %v6197_v59 = vld [vmem:[%s7877_s27 + $0x11e] sm:$0xff] }
 0x138   : > { %6936 = vmatmul.mubr.msk.f32.gmra.mrb[2].mxu1 %vm297_vm1, %v8478_v46  ;;  %7268 = vmatmul.mubr.msk.f32.gmra.mrb[26].mxu0 %vm297_vm1, %v6095_v40  ;;  %v6100_v46 = vld [vmem:[%s7877_s27 + $0x125] sm:$0xff] }
 0x139   : > { %6938 = vmatprep.mubr.msk.f32.mxu1 %vm297_vm1, %v8481_v47  ;;  %7270 = vmatprep.mubr.msk.f32.mxu0 %vm297_vm1, %v6096_v0  ;;  %v6101_v47 = vld [vmem:[%s7877_s27 + $0x12d] sm:$0xff]  ;;  %v5807_v0 = vld [vmem:[%s7877_s27 + $0x11b] sm:$0xff] }
 0x13a   : > { %v6198_v40 = vld [vmem:[%s7877_s27 + $0x126] sm:$0xff] }
 0x13c   : > { %6939 = vmatmul.mubr.msk.f32.gmra.mrb[4].mxu1 %vm297_vm1, %v8492_v1  ;;  %7271 = vmatmul.mubr.msk.f32.gmra.mrb[28].mxu0 %vm297_vm1, %v6097_v42  ;;  %v6102_v1 = vld [vmem:[%s7877_s27 + $0x135] sm:$0xff] }
 0x13d   : > { %6941 = vmatprep.mubr.msk.f32.mxu1 %vm297_vm1, %v8495_v49  ;;  %7273 = vmatprep.mubr.msk.f32.mxu0 %vm297_vm1, %v6098_v5  ;;  %v6103_v49 = vld [vmem:[%s7877_s27 + $0x13d] sm:$0xff]  ;;  %v6199_v42 = vld [vmem:[%s7877_s27 + $0x12e] sm:$0xff] }
 0x13e   : > { %v5808_v5 = vld [vmem:[%s7877_s27 + $0x123] sm:$0xff] }
 0x140   : > { %6942 = vmatmul.mubr.msk.f32.gmra.mrb[6].mxu1 %vm297_vm1, %v8506_v51  ;;  %7274 = vmatmul.mubr.msk.f32.gmra.mrb[30].mxu0 %vm297_vm1, %v6099_v44  ;;  %v6104_v51 = vld [vmem:[%s7877_s27 + $0x145] sm:$0xff]  ;;  %v6200_v44 = vld [vmem:[%s7877_s27 + $0x136] sm:$0xff] }
 0x141   : > { %6944 = vmatprep.mubr.msk.f32.mxu1 %vm297_vm1, %v8509_v52  ;;  %7276 = vmatprep.mubr.msk.f32.mxu0 %vm297_vm1, %v6100_v46  ;;  %v6105_v52 = vld [vmem:[%s7877_s27 + $0x14d] sm:$0xff] }
 0x142   : > { %v5809_v46 = vld [vmem:[%s7877_s27 + $0x12b] sm:$0xff] }
 0x144   : > { %6945 = vmatmul.mubr.msk.f32.gmra.mrb[8].mxu1 %vm297_vm1, %v8520_v54  ;;  %7277 = vmatmul.mubr.msk.f32.gmra.mrb[32].mxu0 %vm297_vm1, %v6101_v47  ;;  %v6106_v54 = vld [vmem:[%s7877_s27 + $0x155] sm:$0xff]  ;;  %v6201_v47 = vld [vmem:[%s7877_s27 + $0x13e] sm:$0xff] }
 0x145   : > { %6947 = vmatprep.mubr.msk.f32.mxu1 %vm297_vm1, %v8523_v56  ;;  %7279 = vmatprep.mubr.msk.f32.mxu0 %vm297_vm1, %v6102_v1  ;;  %v6107_v56 = vld [vmem:[%s7877_s27 + $0x15d] sm:$0xff]  ;;  %v5810_v1 = vld [vmem:[%s7877_s27 + $0x133] sm:$0xff] }
 0x148   : > { %6948 = vmatmul.mubr.msk.f32.gmra.mrb[10].mxu1 %vm297_vm1, %v8534_v58  ;;  %7280 = vmatmul.mubr.msk.f32.gmra.mrb[34].mxu0 %vm297_vm1, %v6103_v49  ;;  %v6108_v58 = vld [vmem:[%s7877_s27 + $0x165] sm:$0xff] }
 0x149   : > { %6950 = vmatprep.mubr.msk.f32.mxu1 %vm297_vm1, %v8537_v63  ;;  %7282 = vmatprep.mubr.msk.f32.mxu0 %vm297_vm1, %v6104_v51  ;;  %v6109_v63 = vld [vmem:[%s7877_s27 + $0x16d] sm:$0xff]  ;;  %v5811_v51 = vld [vmem:[%s7877_s27 + $0x13b] sm:$0xff] }
 0x14a   : > { %v6202_v49 = vld [vmem:[%s7877_s27 + $0x146] sm:$0xff] }
 0x14c   : > { %6951 = vmatmul.mubr.msk.f32.gmra.mrb[12].mxu1 %vm297_vm1, %v8548_v4  ;;  %7283 = vmatmul.mubr.msk.f32.gmra.mrb[36].mxu0 %vm297_vm1, %v6105_v52  ;;  %v6110_v4 = vld [vmem:[%s7877_s27 + $0x175] sm:$0xff] }
 0x14d   : > { %6953 = vmatprep.mubr.msk.f32.mxu1 %vm297_vm1, %v8551_v8  ;;  %7285 = vmatprep.mubr.msk.f32.mxu0 %vm297_vm1, %v6106_v54  ;;  %v6111_v8 = vld [vmem:[%s7877_s27 + $0x17d] sm:$0xff]  ;;  %v6203_v52 = vld [vmem:[%s7877_s27 + $0x14e] sm:$0xff] }
 0x14e   : > { %v5812_v54 = vld [vmem:[%s7877_s27 + $0x143] sm:$0xff] }
 0x150   : > { %6954 = vmatmul.mubr.msk.f32.gmra.mrb[14].mxu1 %vm297_vm1, %v8562_v13  ;;  %7286 = vmatmul.mubr.msk.f32.gmra.mrb[38].mxu0 %vm297_vm1, %v6107_v56  ;;  %v6112_v13 = vld [vmem:[%s7877_s27 + $0x185] sm:$0xff]  ;;  %v6204_v56 = vld [vmem:[%s7877_s27 + $0x156] sm:$0xff] }
 0x151   : > { %6956 = vmatprep.mubr.msk.f32.mxu1 %vm297_vm1, %v8565_v17  ;;  %7288 = vmatprep.mubr.msk.f32.mxu0 %vm297_vm1, %v6108_v58  ;;  %v6113_v17 = vld [vmem:[%s7877_s27 + $0x18d] sm:$0xff] }
 0x152   : > { %v5813_v58 = vld [vmem:[%s7877_s27 + $0x14b] sm:$0xff] }
 0x154   : > { %6957 = vmatmul.mubr.msk.f32.gmra.mrb[16].mxu1 %vm297_vm1, %v8576_v19  ;;  %7289 = vmatmul.mubr.msk.f32.gmra.mrb[40].mxu0 %vm297_vm1, %v6109_v63  ;;  %v6114_v19 = vld [vmem:[%s7877_s27 + $0x195] sm:$0xff]  ;;  %v6205_v63 = vld [vmem:[%s7877_s27 + $0x15e] sm:$0xff] }
 0x155   : > { %6959 = vmatprep.mubr.msk.f32.mxu1 %vm297_vm1, %v8579_v21  ;;  %7291 = vmatprep.mubr.msk.f32.mxu0 %vm297_vm1, %v6110_v4  ;;  %v6115_v21 = vld [vmem:[%s7877_s27 + $0x19d] sm:$0xff]  ;;  %v5814_v4 = vld [vmem:[%s7877_s27 + $0x153] sm:$0xff] }
 0x158   : > { %6960 = vmatmul.mubr.msk.f32.gmra.mrb[18].mxu1 %vm297_vm1, %v8590_v23  ;;  %7292 = vmatmul.mubr.msk.f32.gmra.mrb[42].mxu0 %vm297_vm1, %v6111_v8  ;;  %v6166_v23 = vld [vmem:[%s7877_s27 + $0x26] sm:$0xff] }
 0x159   : > { %6962 = vmatprep.mubr.msk.f32.mxu1 %vm297_vm1, %v8593_v25  ;;  %7294 = vmatprep.mubr.msk.f32.mxu0 %vm297_vm1, %v6112_v13  ;;  %v6167_v25 = vld [vmem:[%s7877_s27 + $0x2e] sm:$0xff]  ;;  %v6206_v8 = vld [vmem:[%s7877_s27 + $0x166] sm:$0xff]  ;;  %v5815_v13 = vld [vmem:[%s7877_s27 + $0x15b] sm:$0xff] }
 0x15c   : > { %6963 = vmatmul.mubr.msk.f32.gmra.mrb[20].mxu1 %vm297_vm1, %v8604_v29  ;;  %7295 = vmatmul.mubr.msk.f32.gmra.mrb[44].mxu0 %vm297_vm1, %v6113_v17  ;;  %v6168_v29 = vld [vmem:[%s7877_s27 + $0x36] sm:$0xff]  ;;  %v6207_v17 = vld [vmem:[%s7877_s27 + $0x16e] sm:$0xff] }
 0x15d   : > { %6965 = vmatprep.mubr.msk.f32.mxu1 %vm297_vm1, %v8608_v33  ;;  %7297 = vmatprep.mubr.msk.f32.mxu0 %vm297_vm1, %v6114_v19  ;;  %v6169_v33 = vld [vmem:[%s7877_s27 + $0x3e] sm:$0xff] }
 0x15e   : > { %v5816_v19 = vld [vmem:[%s7877_s27 + $0x163] sm:$0xff] }
 0x160   : > { %6966 = vmatmul.mubr.msk.f32.gmra.mrb[22].mxu1 %vm297_vm1, %v8618_v37  ;;  %7298 = vmatmul.mubr.msk.f32.gmra.mrb[46].mxu0 %vm297_vm1, %v6115_v21  ;;  %v6170_v37 = vld [vmem:[%s7877_s27 + $0x46] sm:$0xff]  ;;  %v6208_v21 = vld [vmem:[%s7877_s27 + $0x176] sm:$0xff] }
 0x161   : > { %6968 = vmatprep.mubr.msk.f32.mxu1 %vm297_vm1, %v8622_v41  ;;  %7302 = vmatprep.mubr.msk.f32.mxu0 %vm297_vm1, %v6166_v23  ;;  %v6171_v41 = vld [vmem:[%s7877_s27 + $0x4e] sm:$0xff] }
 0x162   : > { %v5817_v23 = vld [vmem:[%s7877_s27 + $0x16b] sm:$0xff] }
 0x164   : > { %6969 = vmatmul.mubr.msk.f32.gmra.mrb[24].mxu1 %vm297_vm1, %v8633_v45  ;;  %7303 = vmatmul.mubr.msk.f32.vlgmr.msra.gmra.mrb[0].mxu0 %vm297_vm1, %v6167_v25  ;;  %v6172_v45 = vld [vmem:[%s7877_s27 + $0x56] sm:$0xff]  ;;  %v6209_v25 = vld [vmem:[%s7877_s27 + $0x17e] sm:$0xff] }
 0x165   : > { %6971 = vmatprep.mubr.msk.f32.mxu1 %vm297_vm1, %v8638_v50  ;;  %7305 = vmatprep.mubr.msk.f32.mxu0 %vm297_vm1, %v6168_v29  ;;  %v6173_v50 = vld [vmem:[%s7877_s27 + $0x5e] sm:$0xff]  ;;  %v5818_v29 = vld [vmem:[%s7877_s27 + $0x173] sm:$0xff] }
 0x168   : > { %6972 = vmatmul.mubr.msk.f32.gmra.mrb[26].mxu1 %vm297_vm1, %v8648_v53  ;;  %7306 = vmatmul.mubr.msk.f32.gmra.mrb[2].mxu0 %vm297_vm1, %v6169_v33  ;;  %v6174_v53 = vld [vmem:[%s7877_s27 + $0x66] sm:$0xff] }
 0x169   : > { %6974 = vmatprep.mubr.msk.f32.mxu1 %vm297_vm1, %v8652_v57  ;;  %7308 = vmatprep.mubr.msk.f32.mxu0 %vm297_vm1, %v6170_v37  ;;  %v6175_v57 = vld [vmem:[%s7877_s27 + $0x6e] sm:$0xff]  ;;  %v6210_v33 = vld [vmem:[%s7877_s27 + $0x186] sm:$0xff]  ;;  %v5819_v37 = vld [vmem:[%s7877_s27 + $0x17b] sm:$0xff] }
 0x16c   : > { %6975 = vmatmul.mubr.msk.f32.gmra.mrb[28].mxu1 %vm297_vm1, %v8662_v2  ;;  %7309 = vmatmul.mubr.msk.f32.gmra.mrb[4].mxu0 %vm297_vm1, %v6171_v41  ;;  %v6176_v2 = vld [vmem:[%s7877_s27 + $0x76] sm:$0xff]  ;;  %v6211_v41 = vld [vmem:[%s7877_s27 + $0x18e] sm:$0xff] }
 0x16d   : > { %6977 = vmatprep.mubr.msk.f32.mxu1 %vm297_vm1, %v8666_v10  ;;  %7311 = vmatprep.mubr.msk.f32.mxu0 %vm297_vm1, %v6172_v45  ;;  %v6177_v10 = vld [vmem:[%s7877_s27 + $0x7e] sm:$0xff] }
 0x16e   : > { %v5820_v45 = vld [vmem:[%s7877_s27 + $0x183] sm:$0xff] }
 0x170   : > { %6978 = vmatmul.mubr.msk.f32.gmra.mrb[30].mxu1 %vm297_vm1, %v8676_v15  ;;  %7312 = vmatmul.mubr.msk.f32.gmra.mrb[6].mxu0 %vm297_vm1, %v6173_v50  ;;  %v6178_v15 = vld [vmem:[%s7877_s27 + $0x86] sm:$0xff]  ;;  %v6212_v50 = vld [vmem:[%s7877_s27 + $0x196] sm:$0xff] }
 0x171   : > { %6980 = vmatprep.mubr.msk.f32.mxu1 %vm297_vm1, %v8680_v62  ;;  %7314 = vmatprep.mubr.msk.f32.mxu0 %vm297_vm1, %v6174_v53  ;;  %v6179_v62 = vld [vmem:[%s7877_s27 + $0x8e] sm:$0xff] }
 0x172   : > { %v5821_v53 = vld [vmem:[%s7877_s27 + $0x18b] sm:$0xff] }
 0x174   : > { %6981 = vmatmul.mubr.msk.f32.gmra.mrb[32].mxu1 %vm297_vm1, %v8690_v3  ;;  %7315 = vmatmul.mubr.msk.f32.gmra.mrb[8].mxu0 %vm297_vm1, %v6175_v57  ;;  %v6180_v3 = vld [vmem:[%s7877_s27 + $0x96] sm:$0xff]  ;;  %v6213_v57 = vld [vmem:[%s7877_s27 + $0x19e] sm:$0xff] }
 0x175   : > { %6983 = vmatprep.mubr.msk.f32.mxu1 %vm297_vm1, %v8694_v7  ;;  %7317 = vmatprep.mubr.msk.f32.mxu0 %vm297_vm1, %v6176_v2  ;;  %v6181_v7 = vld [vmem:[%s7877_s27 + $0x9e] sm:$0xff] }
 0x178   : > { %6984 = vmatmul.mubr.msk.f32.gmra.mrb[34].mxu1 %vm297_vm1, %v8704_v12  ;;  %7318 = vmatmul.mubr.msk.f32.gmra.mrb[10].mxu0 %vm297_vm1, %v6177_v10  ;;  %v6183_v12 = vld [vmem:[%s7877_s27 + $0xae] sm:$0xff] }
 0x179   : > { %6986 = vmatprep.mubr.msk.f32.mxu1 %vm297_vm1, %v8708_v16  ;;  %7320 = vmatprep.mubr.msk.f32.mxu0 %vm297_vm1, %v6178_v15  ;;  %v6185_v16 = vld [vmem:[%s7877_s27 + $0xbe] sm:$0xff] }
 0x17c   : > { %6987 = vmatmul.mubr.msk.f32.gmra.mrb[36].mxu1 %vm297_vm1, %v8718_v20  ;;  %7321 = vmatmul.mubr.msk.f32.gmra.mrb[12].mxu0 %vm297_vm1, %v6179_v62  ;;  %v6187_v20 = vld [vmem:[%s7877_s27 + $0xce] sm:$0xff] }
 0x17d   : > { %6989 = vmatprep.mubr.msk.f32.mxu1 %vm297_vm1, %v8722_v24  ;;  %7323 = vmatprep.mubr.msk.f32.mxu0 %vm297_vm1, %v6180_v3  ;;  %v6188_v24 = vld [vmem:[%s7877_s27 + $0xd6] sm:$0xff] }
 0x180   : > { %6990 = vmatmul.mubr.msk.f32.gmra.mrb[38].mxu1 %vm297_vm1, %v8732_v28  ;;  %7324 = vmatmul.mubr.msk.f32.gmra.mrb[14].mxu0 %vm297_vm1, %v6181_v7  ;;  %v6189_v28 = vld [vmem:[%s7877_s27 + $0xde] sm:$0xff] }
 0x181   : > { %6992 = vmatprep.mubr.msk.f32.mxu1 %vm297_vm1, %v8736_v32  ;;  %7326 = vmatprep.mubr.msk.f32.mxu0 %vm297_vm1, %v6182_v9  ;;  %v6190_v32 = vld [vmem:[%s7877_s27 + $0xe6] sm:$0xff] }
 0x184   : > { %6993 = vmatmul.mubr.msk.f32.gmra.mrb[40].mxu1 %vm297_vm1, %v8746_v36  ;;  %7327 = vmatmul.mubr.msk.f32.gmra.mrb[16].mxu0 %vm297_vm1, %v6183_v12  ;;  %v6191_v36 = vld [vmem:[%s7877_s27 + $0xee] sm:$0xff] }
 0x185   : > { %6995 = vmatprep.mubr.msk.f32.mxu1 %vm297_vm1, %v8750_v27  ;;  %7329 = vmatprep.mubr.msk.f32.mxu0 %vm297_vm1, %v6184_v14  ;;  %v6192_v27 = vld [vmem:[%s7877_s27 + $0xf6] sm:$0xff] }
 0x188   : > { %6996 = vmatmul.mubr.msk.f32.gmra.mrb[42].mxu1 %vm297_vm1, %v8760_v35  ;;  %7330 = vmatmul.mubr.msk.f32.gmra.mrb[18].mxu0 %vm297_vm1, %v6185_v16  ;;  %v6193_v35 = vld [vmem:[%s7877_s27 + $0xfe] sm:$0xff] }
 0x189   : > { %6998 = vmatprep.mubr.msk.f32.mxu1 %vm297_vm1, %v8764_v43  ;;  %7332 = vmatprep.mubr.msk.f32.mxu0 %vm297_vm1, %v6186_v18  ;;  %v6194_v43 = vld [vmem:[%s7877_s27 + $0x106] sm:$0xff] }
 0x18c   : > { %6999 = vmatmul.mubr.msk.f32.gmra.mrb[44].mxu1 %vm297_vm1, %v8774_v11  ;;  %7333 = vmatmul.mubr.msk.f32.gmra.mrb[20].mxu0 %vm297_vm1, %v6187_v20  ;;  %v6195_v11 = vld [vmem:[%s7877_s27 + $0x10e] sm:$0xff] }
 0x18d   : > { %7001 = vmatprep.mubr.msk.f32.mxu1 %vm297_vm1, %v5722_v22  ;;  %7335 = vmatprep.mubr.msk.f32.mxu0 %vm297_vm1, %v6188_v24 }
 0x190   : > { %7002 = vmatmul.mubr.msk.f32.gmra.mrb[46].mxu1 %vm297_vm1, %v5723_v26  ;;  %7336 = vmatmul.mubr.msk.f32.gmra.mrb[22].mxu0 %vm297_vm1, %v6189_v28 }
 0x191   : > { %7042 = vmatprep.mubr.msk.f32.mxu1 %vm297_vm1, %v5798_v30  ;;  %7338 = vmatprep.mubr.msk.f32.mxu0 %vm297_vm1, %v6190_v32 }
 0x194   : > { %7043 = vmatmul.mubr.msk.f32.vlgmr.msra.gmra.mrb[24].mxu1 %vm297_vm1, %v5799_v34  ;;  %7339 = vmatmul.mubr.msk.f32.gmra.mrb[24].mxu0 %vm297_vm1, %v6191_v36 }
 0x195   : > { %7045 = vmatprep.mubr.msk.f32.mxu1 %vm297_vm1, %v5800_v38  ;;  %7341 = vmatprep.mubr.msk.f32.mxu0 %vm297_vm1, %v6192_v27 }
 0x198   : > { %7046 = vmatmul.mubr.msk.f32.gmra.mrb[26].mxu1 %vm297_vm1, %v5801_v31  ;;  %7342 = vmatmul.mubr.msk.f32.gmra.mrb[26].mxu0 %vm297_vm1, %v6193_v35 }
 0x199   : > { %7048 = vmatprep.mubr.msk.f32.mxu1 %vm297_vm1, %v5802_v39  ;;  %7344 = vmatprep.mubr.msk.f32.mxu0 %vm297_vm1, %v6194_v43 }
 0x19c   : > { %7049 = vmatmul.mubr.msk.f32.gmra.mrb[28].mxu1 %vm297_vm1, %v5803_v48  ;;  %7345 = vmatmul.mubr.msk.f32.gmra.mrb[28].mxu0 %vm297_vm1, %v6195_v11  ;;  %v9095_v48 = vld [vmem:[%s9194_s2] ss:$0 sm:$0xff] }
 0x19d   : > { %7051 = vmatprep.mubr.msk.f32.mxu1 %vm297_vm1, %v5804_v55  ;;  %7347 = vmatprep.mubr.msk.f32.mxu0 %vm297_vm1, %v6196_v61 }
 0x1a0   : > { %7052 = vmatmul.mubr.msk.f32.gmra.mrb[30].mxu1 %vm297_vm1, %v5805_v6  ;;  %7348 = vmatmul.mubr.msk.f32.gmra.mrb[30].mxu0 %vm297_vm1, %v6197_v59 }
 0x1a1   : > { %7054 = vmatprep.mubr.msk.f32.mxu1 %vm297_vm1, %v5806_v60  ;;  %7350 = vmatprep.mubr.msk.f32.mxu0 %vm297_vm1, %v6198_v40 }
 0x1a4   : > { %7055 = vmatmul.mubr.msk.f32.gmra.mrb[32].mxu1 %vm297_vm1, %v5807_v0  ;;  %7351 = vmatmul.mubr.msk.f32.gmra.mrb[32].mxu0 %vm297_vm1, %v6199_v42 }
 0x1a5   : > { %7057 = vmatprep.mubr.msk.f32.mxu1 %vm297_vm1, %v5808_v5  ;;  %7353 = vmatprep.mubr.msk.f32.mxu0 %vm297_vm1, %v6200_v44 }
 0x1a8   : > { %7058 = vmatmul.mubr.msk.f32.gmra.mrb[34].mxu1 %vm297_vm1, %v5809_v46  ;;  %7354 = vmatmul.mubr.msk.f32.gmra.mrb[34].mxu0 %vm297_vm1, %v6201_v47 }
 0x1a9   : > { %7060 = vmatprep.mubr.msk.f32.mxu1 %vm297_vm1, %v5810_v1  ;;  %7356 = vmatprep.mubr.msk.f32.mxu0 %vm297_vm1, %v6202_v49 }
 0x1ac   : > { %7061 = vmatmul.mubr.msk.f32.gmra.mrb[36].mxu1 %vm297_vm1, %v5811_v51  ;;  %7357 = vmatmul.mubr.msk.f32.gmra.mrb[36].mxu0 %vm297_vm1, %v6203_v52 }
 0x1ad   : > { %7063 = vmatprep.mubr.msk.f32.mxu1 %vm297_vm1, %v5812_v54  ;;  %7359 = vmatprep.mubr.msk.f32.mxu0 %vm297_vm1, %v6204_v56 }
 0x1b0   : > { %7064 = vmatmul.mubr.msk.f32.gmra.mrb[38].mxu1 %vm297_vm1, %v5813_v58  ;;  %7360 = vmatmul.mubr.msk.f32.gmra.mrb[38].mxu0 %vm297_vm1, %v6205_v63 }
 0x1b1   : > { %7066 = vmatprep.mubr.msk.f32.mxu1 %vm297_vm1, %v5814_v4  ;;  %7362 = vmatprep.mubr.msk.f32.mxu0 %vm297_vm1, %v6206_v8 }
 0x1b4   : > { %7067 = vmatmul.mubr.msk.f32.gmra.mrb[40].mxu1 %vm297_vm1, %v5815_v13  ;;  %7363 = vmatmul.mubr.msk.f32.gmra.mrb[40].mxu0 %vm297_vm1, %v6207_v17 }
 0x1b5   : > { %7069 = vmatprep.mubr.msk.f32.mxu1 %vm297_vm1, %v5816_v19  ;;  %7365 = vmatprep.mubr.msk.f32.mxu0 %vm297_vm1, %v6208_v21 }
 0x1b8   : > { %7070 = vmatmul.mubr.msk.f32.gmra.mrb[42].mxu1 %vm297_vm1, %v5817_v23  ;;  %7366 = vmatmul.mubr.msk.f32.gmra.mrb[42].mxu0 %vm297_vm1, %v6209_v25 }
 0x1b9   : > { %7072 = vmatprep.mubr.msk.f32.mxu1 %vm297_vm1, %v5818_v29  ;;  %7368 = vmatprep.mubr.msk.f32.mxu0 %vm297_vm1, %v6210_v33 }
 0x1bc   : > { %7073 = vmatmul.mubr.msk.f32.gmra.mrb[44].mxu1 %vm297_vm1, %v5819_v37  ;;  %7369 = vmatmul.mubr.msk.f32.gmra.mrb[44].mxu0 %vm297_vm1, %v6211_v41 }
 0x1bd   : > { %7075 = vmatprep.mubr.msk.f32.mxu1 %vm297_vm1, %v5820_v45  ;;  %7371 = vmatprep.mubr.msk.f32.mxu0 %vm297_vm1, %v6212_v50 }
 0x1c0   : > { %7076 = vmatmul.mubr.msk.f32.gmra.mrb[46].mxu1 %vm297_vm1, %v5821_v53  ;;  %7372 = vmatmul.mubr.msk.f32.gmra.mrb[46].mxu0 %vm297_vm1, %v6213_v57 }
 0x207   : > { %v6934_v2 = vpop.f32.mrb[0].mxu1 }
 0x208   : > { %v2020_v10 = vpop.f32.mrb[1].mxu1 }
 0x20b   : > { %v6937_v15 = vpop.f32.mrb[2].mxu1 }
 0x20c   : > { %v2030_v62 = vpop.f32.mrb[3].mxu1 }
 0x20f   : > { %v6940_v3 = vpop.f32.mrb[4].mxu1 }
 0x210   : > { %v2040_v7 = vpop.f32.mrb[5].mxu1 }
 0x213   : > { %v6943_v9 = vpop.f32.mrb[6].mxu1 }
 0x214   : > { %v2050_v12 = vpop.f32.mrb[7].mxu1 }
 0x217   : > { %v6946_v14 = vpop.f32.mrb[8].mxu1 }
 0x218   : > { %v2060_v16 = vpop.f32.mrb[9].mxu1 }
 0x21b   : > { %v6949_v18 = vpop.f32.mrb[10].mxu1 }
 0x21c   : > { %v2070_v20 = vpop.f32.mrb[11].mxu1 }
 0x21f   : > { %v6952_v22 = vpop.f32.mrb[12].mxu1 }
 0x220   : > { %v2080_v24 = vpop.f32.mrb[13].mxu1 }
 0x223   : > { %v9072_v26 = vpop.f32.mrb[14].mxu1 }
 0x224   : > { %v9074_v28 = vpop.f32.mrb[15].mxu1 }
 0x227   : > { %v9076_v30 = vpop.f32.mrb[16].mxu1 }
 0x228   : > { %v9078_v32 = vpop.f32.mrb[17].mxu1 }
 0x22b   : > { %v9080_v34 = vpop.f32.mrb[18].mxu1 }
 0x22c   : > { %v9082_v36 = vpop.f32.mrb[19].mxu1 }
 0x22f   : > { %v9084_v38 = vpop.f32.mrb[20].mxu1 }
 0x230   : > { %v9086_v27 = vpop.f32.mrb[21].mxu1 }
 0x233   : > { %v9088_v31 = vpop.f32.mrb[22].mxu1 }
 0x234   : > { %v9090_v35 = vpop.f32.mrb[23].mxu1 }
 0x237   : > { %v7304_v39 = vpop.f32.mrb[0].mxu0 }
 0x238   : > { %v7376_v43 = vadd.f32 %v7304_v39, %v6934_v2  ;;  %v4780_v11 = vpop.f32.mrb[1].mxu0 }
 0x239   : > { %v7377_v55 = vadd.f32 %v4780_v11, %v2020_v10 }
 0x23a   : > { %v5075_v61 = vadd.f32 %v7376_v43, %v9095_v48 }
 0x23b   : > { %v7307_v6 = vpop.f32.mrb[2].mxu0  ;;  %v5074_v59 = vadd.f32 %v7377_v55, %v9095_v48 }
 0x23c   : > { %v7378_v60 = vadd.f32 %v7307_v6, %v6937_v15  ;;  %v4790_v40 = vpop.f32.mrb[3].mxu0  ;;  %v5123_v47 = vmul.f32 0.1, %v5075_v61 }
 0x23d   : > { %v7379_v0 = vadd.f32 %v4790_v40, %v2030_v62  ;;  %v5122_v42 = vmul.f32 0.1, %v5074_v59 }
 0x23e   : > { %v5077_v52 = vadd.f32 %v7378_v60, %v9095_v48  ;;  %v5171_v56 = vmax.f32 %v5075_v61, %v5123_v47 }
 0x23f   : > { %v5076_v5 = vadd.f32 %v7379_v0, %v9095_v48  ;;  %v7310_v44 = vpop.f32.mrb[4].mxu0  ;;  %v5170_v46 = vmax.f32 %v5074_v59, %v5122_v42 }
 0x240   : > { %v7380_v1 = vadd.f32 %v7310_v44, %v6940_v3  ;;  %v4800_v49 = vpop.f32.mrb[5].mxu0  ;;  %v5125_v21 = vmul.f32 0.1, %v5077_v52 }
 0x241   : > { %v7381_v51 = vadd.f32 %v4800_v49, %v2040_v7  ;;  %5218 = vxpose.xlu0.b32.start [1/16] (narrow) %v5170_v46, 8  ;;  %v5124_v58 = vmul.f32 0.1, %v5076_v5 }
 0x242   : > { %v5079_v33 = vadd.f32 %v7380_v1, %v9095_v48  ;;  %v5173_v41 = vmax.f32 %v5077_v52, %v5125_v21 }
 0x243   : > { %v7313_v54 = vpop.f32.mrb[6].mxu0  ;;  %v5078_v13 = vadd.f32 %v7381_v51, %v9095_v48  ;;  %v5172_v19 = vmax.f32 %v5076_v5, %v5124_v58 }
 0x244   : > { %v7382_v63 = vadd.f32 %v7313_v54, %v6943_v9  ;;  %v4810_v4 = vpop.f32.mrb[7].mxu0  ;;  %v5127_v62 = vmul.f32 0.1, %v5079_v33 }
 0x245   : > { %v7383_v8 = vadd.f32 %v4810_v4, %v2050_v12  ;;  %5219 = vxpose.xlu0.b32.cont [2/16] (narrow) %v5171_v56, 8  ;;  %v5126_v45 = vmul.f32 0.1, %v5078_v13 }
 0x246   : > { %v5081_v12 = vadd.f32 %v7382_v63, %v9095_v48 }
 0x247   : > { %v7316_v17 = vpop.f32.mrb[8].mxu0  ;;  %v5080_v2 = vadd.f32 %v7383_v8, %v9095_v48  ;;  %v5174_v15 = vmax.f32 %v5078_v13, %v5126_v45 }
 0x248   : > { %v7384_v23 = vadd.f32 %v7316_v17, %v6946_v14  ;;  %v4820_v25 = vpop.f32.mrb[9].mxu0  ;;  %v5129_v61 = vmul.f32 0.1, %v5081_v12 }
 0x249   : > { %v7385_v29 = vadd.f32 %v4820_v25, %v2060_v16  ;;  %5220 = vxpose.xlu0.b32.cont [3/16] (narrow) %v5172_v19, 8  ;;  %v5175_v16 = vmax.f32 %v5079_v33, %v5127_v62  ;;  %v5128_v39 = vmul.f32 0.1, %v5080_v2 }
 0x24a   : > { %v5083_v60 = vadd.f32 %v7384_v23, %v9095_v48  ;;  %v5177_v0 = vmax.f32 %v5081_v12, %v5129_v61 }
 0x24b   : > { %v7319_v37 = vpop.f32.mrb[10].mxu0  ;;  %v5082_v11 = vadd.f32 %v7385_v29, %v9095_v48  ;;  %v5176_v55 = vmax.f32 %v5080_v2, %v5128_v39 }
 0x24c   : > { %v7386_v50 = vadd.f32 %v7319_v37, %v6949_v18  ;;  %v4830_v53 = vpop.f32.mrb[11].mxu0 }
 0x24d   : > { %v7387_v57 = vadd.f32 %v4830_v53, %v2070_v20  ;;  %5221 = vxpose.xlu0.b32.cont [4/16] (narrow) %v5173_v41, 8 }
 0x24f   : > { %v7322_v10 = vpop.f32.mrb[12].mxu0  ;;  %v5084_v47 = vadd.f32 %v7387_v57, %v9095_v48 }
 0x250   : > { %v9104_v3 = vadd.f32 %v7322_v10, %v6952_v22  ;;  %v4840_v7 = vpop.f32.mrb[13].mxu0 }
 0x251   : > { %v7389_v9 = vadd.f32 %v4840_v7, %v2080_v24  ;;  %5222 = vxpose.xlu0.b32.cont [5/16] (narrow) %v5174_v15, 8  ;;  %v5132_v17 = vmul.f32 0.1, %v5084_v47 }
 0x253   : > { %v7325_v14 = vpop.f32.mrb[14].mxu0  ;;  %v5180_v41 = vmax.f32 %v5084_v47, %v5132_v17 }
 0x254   : > { %v9108_v18 = vadd.f32 %v7325_v14, %v9072_v26  ;;  %v4850_v20 = vpop.f32.mrb[15].mxu0 }
 0x255   : > { %v9111_v43 = vadd.f32 %v4850_v20, %v9074_v28  ;;  %5223 = vxpose.xlu0.b32.cont [6/16] (narrow) %v5175_v16, 8  ;;  %v5130_v28 = vmul.f32 0.1, %v5082_v11 }
 0x257   : > { %v7328_v22 = vpop.f32.mrb[16].mxu0  ;;  %v5178_v51 = vmax.f32 %v5082_v11, %v5130_v28 }
 0x258   : > { %v7392_v24 = vadd.f32 %v7328_v22, %v9076_v30  ;;  %v4860_v6 = vpop.f32.mrb[17].mxu0  ;;  %v5088_v22 = vadd.f32 %v9111_v43, %v9095_v48 }
 0x259   : > { %v7393_v59 = vadd.f32 %v4860_v6, %v9078_v32  ;;  %5224 = vxpose.xlu0.b32.cont [7/16] (narrow) %v5176_v55, 8  ;;  %v5131_v32 = vmul.f32 0.1, %v5083_v60 }
 0x25a   : > { %v5091_v26 = vadd.f32 %v7392_v24, %v9095_v48  ;;  %v5136_v47 = vmul.f32 0.1, %v5088_v22 }
 0x25b   : > { %v7331_v40 = vpop.f32.mrb[18].mxu0  ;;  %v5090_v42 = vadd.f32 %v7393_v59, %v9095_v48 }
 0x25c   : > { %v7394_v5 = vadd.f32 %v7331_v40, %v9080_v34  ;;  %v4870_v44 = vpop.f32.mrb[19].mxu0  ;;  %v5139_v54 = vmul.f32 0.1, %v5091_v26  ;;  %v5085_v34 = vadd.f32 %v7386_v50, %v9095_v48 }
 0x25d   : > { %v7395_v46 = vadd.f32 %v4870_v44, %v9082_v36  ;;  %5225 = vxpose.xlu0.b32.cont [8/16] (narrow) %v5177_v0, 8  ;;  %v5138_v30 = vmul.f32 0.1, %v5090_v42  ;;  %v5179_v36 = vmax.f32 %v5083_v60, %v5131_v32 }
 0x25e   : > { %v5093_v4 = vadd.f32 %v7394_v5, %v9095_v48  ;;  %v5187_v13 = vmax.f32 %v5091_v26, %v5139_v54 }
 0x25f   : > { %v5092_v1 = vadd.f32 %v7395_v46, %v9095_v48  ;;  %v7334_v49 = vpop.f32.mrb[20].mxu0  ;;  %v5186_v52 = vmax.f32 %v5090_v42, %v5138_v30  ;;  %v5089_v42 = vadd.f32 %v9108_v18, %v9095_v48 }
 0x260   : > { %v7396_v56 = vadd.f32 %v7334_v49, %v9084_v38  ;;  %v4880_v58 = vpop.f32.mrb[21].mxu0  ;;  %v5086_v38 = vadd.f32 %v7389_v9, %v9095_v48  ;;  %v5141_v50 = vmul.f32 0.1, %v5093_v4 }
 0x261   : > { %v7397_v63 = vadd.f32 %v4880_v58, %v9086_v27  ;;  %5226 = vxpose.xlu0.b32.cont [9/16] (narrow) %v5178_v51, 8  ;;  %5250 = vxpose.xlu1.b32.start [1/16] (narrow) %v5186_v52, 8  ;;  %v5140_v19 = vmul.f32 0.1, %v5092_v1  ;;  %v5133_v27 = vmul.f32 0.1, %v5085_v34 }
 0x262   : > { %v5095_v15 = vadd.f32 %v7396_v56, %v9095_v48  ;;  %v5189_v9 = vmax.f32 %v5093_v4, %v5141_v50  ;;  %v5134_v12 = vmul.f32 0.1, %v5086_v38  ;;  %v5137_v54 = vmul.f32 0.1, %v5089_v42 }
 0x263   : > { %v7337_v8 = vpop.f32.mrb[22].mxu0  ;;  %v5094_v29 = vadd.f32 %v7397_v63, %v9095_v48  ;;  %v5188_v45 = vmax.f32 %v5092_v1, %v5140_v19  ;;  %v5184_v63 = vmax.f32 %v5088_v22, %v5136_v47 }
 0x264   : > { %v7398_v21 = vadd.f32 %v7337_v8, %v9088_v31  ;;  %v4890_v23 = vpop.f32.mrb[23].mxu0  ;;  %v5087_v31 = vadd.f32 %v9104_v3, %v9095_v48  ;;  %v5182_v6 = vmax.f32 %v5086_v38, %v5134_v12  ;;  %v5143_v60 = vmul.f32 0.1, %v5095_v15 }
 0x265   : > { %v7399_v25 = vadd.f32 %v4890_v23, %v9090_v35  ;;  %5227 = vxpose.xlu0.b32.cont [10/16] (narrow) %v5179_v36, 8  ;;  %5251 = vxpose.xlu1.b32.cont [2/16] (narrow) %v5187_v13, 8  ;;  %v5181_v35 = vmax.f32 %v5085_v34, %v5133_v27  ;;  %v5142_v14 = vmul.f32 0.1, %v5094_v29 }
 0x266   : > { %v5135_v55 = vmul.f32 0.1, %v5087_v31  ;;  %v5097_v5 = vadd.f32 %v7398_v21, %v9095_v48  ;;  %v5191_v30 = vmax.f32 %v5095_v15, %v5143_v60  ;;  %v5185_v21 = vmax.f32 %v5089_v42, %v5137_v54 }
 0x267   : > { %v7044_v33 = vpop.f32.mrb[24].mxu1  ;;  %v7340_v37 = vpop.f32.mrb[24].mxu0  ;;  %v5096_v3 = vadd.f32 %v7399_v25, %v9095_v48  ;;  %v5190_v59 = vmax.f32 %v5094_v29, %v5142_v14 }
 0x268   : > { %v7400_v53 = vadd.f32 %v7340_v37, %v7044_v33  ;;  %v2692_v57 = vpop.f32.mrb[25].mxu1  ;;  %v4900_v2 = vpop.f32.mrb[25].mxu0  ;;  %v5183_v43 = vmax.f32 %v5087_v31, %v5135_v55  ;;  %v5145_v36 = vmul.f32 0.1, %v5097_v5 }
 0x269   : > { %v7401_v10 = vadd.f32 %v4900_v2, %v2692_v57  ;;  %5228 = vxpose.xlu0.b32.cont [11/16] (narrow) %v5180_v41, 8  ;;  %5252 = vxpose.xlu1.b32.cont [3/16] (narrow) %v5188_v45, 8  ;;  %v5144_v32 = vmul.f32 0.1, %v5096_v3 }
 0x26a   : > { %v5099_v19 = vadd.f32 %v7400_v53, %v9095_v48  ;;  %v5193_v29 = vmax.f32 %v5097_v5, %v5145_v36 }
 0x26b   : > { %v7047_v62 = vpop.f32.mrb[26].mxu1  ;;  %v7343_v7 = vpop.f32.mrb[26].mxu0  ;;  %v5098_v56 = vadd.f32 %v7401_v10, %v9095_v48  ;;  %v5192_v34 = vmax.f32 %v5096_v3, %v5144_v32 }
 0x26c   : > { %v9134_v16 = vadd.f32 %v7343_v7, %v7047_v62  ;;  %v2702_v39 = vpop.f32.mrb[27].mxu1  ;;  %v4910_v20 = vpop.f32.mrb[27].mxu0  ;;  %v5147_v10 = vmul.f32 0.1, %v5099_v19 }
 0x26d   : > { %v7403_v11 = vadd.f32 %v4910_v20, %v2702_v39  ;;  %5229 = vxpose.xlu0.b32.cont [12/16] (narrow) %v5181_v35, 8  ;;  %5253 = vxpose.xlu1.b32.cont [4/16] (narrow) %v5189_v9, 8  ;;  %v5146_v33 = vmul.f32 0.1, %v5098_v56 }
 0x26e   : > { %v5101_v20 = vadd.f32 %v9134_v16, %v9095_v48  ;;  %v5195_v22 = vmax.f32 %v5099_v19, %v5147_v10 }
 0x26f   : > { %v7050_v61 = vpop.f32.mrb[28].mxu1  ;;  %v7346_v24 = vpop.f32.mrb[28].mxu0  ;;  %v5100_v2 = vadd.f32 %v7403_v11, %v9095_v48  ;;  %v5194_v62 = vmax.f32 %v5098_v56, %v5146_v33 }
 0x270   : > { %v9139_v26 = vadd.f32 %v7346_v24, %v7050_v61  ;;  %v2712_v40 = vpop.f32.mrb[29].mxu1  ;;  %v4920_v0 = vpop.f32.mrb[29].mxu0 }
 0x271   : > { %v9141_v28 = vadd.f32 %v4920_v0, %v2712_v40  ;;  %5230 = vxpose.xlu0.b32.cont [13/16] (narrow) %v5182_v6, 8  ;;  %5254 = vxpose.xlu1.b32.cont [5/16] (narrow) %v5190_v59, 8  ;;  %v5148_v6 = vmul.f32 0.1, %v5100_v2 }
 0x272   : > { %v5103_v56 = vadd.f32 %v9139_v26, %v9095_v48 }
 0x273   : > { %v7053_v44 = vpop.f32.mrb[30].mxu1  ;;  %v7349_v46 = vpop.f32.mrb[30].mxu0  ;;  %v5102_v42 = vadd.f32 %v9141_v28, %v9095_v48 }
 0x274   : > { %v9146_v1 = vadd.f32 %v7349_v46, %v7053_v44  ;;  %v2722_v49 = vpop.f32.mrb[31].mxu1  ;;  %v4930_v51 = vpop.f32.mrb[31].mxu0 }
 0x275   : > { %v9148_v52 = vadd.f32 %v4930_v51, %v2722_v49  ;;  %5231 = vxpose.xlu0.b32.cont [14/16] (narrow) %v5183_v43, 8  ;;  %5255 = vxpose.xlu1.b32.cont [6/16] (narrow) %v5191_v30, 8  ;;  %v5149_v43 = vmul.f32 0.1, %v5101_v20  ;;  %v5196_v30 = vmax.f32 %v5100_v2, %v5148_v6 }
 0x277   : > { %v7056_v18 = vpop.f32.mrb[32].mxu1  ;;  %v7352_v58 = vpop.f32.mrb[32].mxu0 }
 0x278   : > { %v7408_v4 = vadd.f32 %v7352_v58, %v7056_v18  ;;  %v2732_v8 = vpop.f32.mrb[33].mxu1  ;;  %v4940_v13 = vpop.f32.mrb[33].mxu0  ;;  %v5197_v18 = vmax.f32 %v5101_v20, %v5149_v43 }
 0x279   : > { %v7409_v17 = vadd.f32 %v4940_v13, %v2732_v8  ;;  %5232 = vxpose.xlu0.b32.cont [15/16] (narrow) %v5184_v63, 8  ;;  %5256 = vxpose.xlu1.b32.cont [7/16] (narrow) %v5192_v34, 8 }
 0x27a   : > { %v5107_v23 = vadd.f32 %v7408_v4, %v9095_v48  ;;  %v5150_v4 = vmul.f32 0.1, %v5102_v42 }
 0x27b   : > { %v5106_v25 = vadd.f32 %v7409_v17, %v9095_v48  ;;  %v7059_v38 = vpop.f32.mrb[34].mxu1  ;;  %v7355_v27 = vpop.f32.mrb[34].mxu0 }
 0x27c   : > { %v7410_v37 = vadd.f32 %v7355_v27, %v7059_v38  ;;  %v2742_v41 = vpop.f32.mrb[35].mxu1  ;;  %v4950_v45 = vpop.f32.mrb[35].mxu0  ;;  %v5155_v53 = vmul.f32 0.1, %v5107_v23 }
 0x27d   : > { %v7411_v50 = vadd.f32 %v4950_v45, %v2742_v41  ;;  %5233 = vxpose.xlu0.b32.end [16/16] (narrow) %v5185_v21, 8  ;;  %5257 = vxpose.xlu1.b32.cont [8/16] (narrow) %v5193_v29, 8  ;;  %v5154_v57 = vmul.f32 0.1, %v5106_v25  ;;  %v5104_v21 = vadd.f32 %v9148_v52, %v9095_v48  ;;  %v5198_v29 = vmax.f32 %v5102_v42, %v5150_v4 }
 0x27e   : > { %v5109_v11 = vadd.f32 %v7410_v37, %v9095_v48  ;;  %v5203_v24 = vmax.f32 %v5107_v23, %v5155_v53  ;;  %v5151_v23 = vmul.f32 0.1, %v5103_v56 }
 0x27f   : > { %v5108_v31 = vadd.f32 %v7411_v50, %v9095_v48  ;;  %v7062_v35 = vpop.f32.mrb[36].mxu1  ;;  %v7358_v15 = vpop.f32.mrb[36].mxu0  ;;  %v5202_v7 = vmax.f32 %v5106_v25, %v5154_v57  ;;  %v5105_v57 = vadd.f32 %v9146_v1, %v9095_v48 }
 0x280   : > { %v7412_v9 = vadd.f32 %v7358_v15, %v7062_v35  ;;  %v2752_v12 = vpop.f32.mrb[37].mxu1  ;;  %v4960_v14 = vpop.f32.mrb[37].mxu0  ;;  %v5157_v5 = vmul.f32 0.1, %v5109_v11  ;;  %v5199_v2 = vmax.f32 %v5103_v56, %v5151_v23  ;;  %v5152_v15 = vmul.f32 0.1, %v5104_v21 }
 0x281   : > { %v7413_v39 = vadd.f32 %v4960_v14, %v2752_v12  ;;  %5258 = vxpose.xlu1.b32.cont [9/16] (narrow) %v5194_v62, 8  ;;  %5282 = vxpose.xlu0.b32.start [1/16] (narrow) %v5202_v7, 8  ;;  %v5156_v55 = vmul.f32 0.1, %v5108_v31  ;;  %v5153_v14 = vmul.f32 0.1, %v5105_v57 }
 0x282   : > { %v5111_v28 = vadd.f32 %v7412_v9, %v9095_v48  ;;  %v5205_v36 = vmax.f32 %v5109_v11, %v5157_v5 }
 0x283   : > { %v7065_v3 = vpop.f32.mrb[38].mxu1  ;;  %v7361_v61 = vpop.f32.mrb[38].mxu0  ;;  %v5110_v16 = vadd.f32 %v7413_v39, %v9095_v48  ;;  %v5204_v47 = vmax.f32 %v5108_v31, %v5156_v55 }
 0x284   : > { %v7414_v59 = vadd.f32 %v7361_v61, %v7065_v3  ;;  %v2762_v60 = vpop.f32.mrb[39].mxu1  ;;  %v4970_v40 = vpop.f32.mrb[39].mxu0  ;;  %v5159_v25 = vmul.f32 0.1, %v5111_v28  ;;  %v5201_v3 = vmax.f32 %v5105_v57, %v5153_v14 }
 0x285   : > { %v7415_v0 = vadd.f32 %v4970_v40, %v2762_v60  ;;  %5259 = vxpose.xlu1.b32.cont [10/16] (narrow) %v5195_v22, 8  ;;  %5283 = vxpose.xlu0.b32.cont [2/16] (narrow) %v5203_v24, 8  ;;  %v5158_v58 = vmul.f32 0.1, %v5110_v16  ;;  %v5200_v22 = vmax.f32 %v5104_v21, %v5152_v15 }
 0x286   : > { %v5113_v52 = vadd.f32 %v7414_v59, %v9095_v48  ;;  %v5207_v35 = vmax.f32 %v5111_v28, %v5159_v25 }
 0x287   : > { %v7068_v44 = vpop.f32.mrb[40].mxu1  ;;  %v7364_v46 = vpop.f32.mrb[40].mxu0  ;;  %v5112_v26 = vadd.f32 %v7415_v0, %v9095_v48  ;;  %v5206_v33 = vmax.f32 %v5110_v16, %v5158_v58 }
 0x288   : > { %v7416_v32 = vadd.f32 %v7364_v46, %v7068_v44  ;;  %v2772_v49 = vpop.f32.mrb[41].mxu1  ;;  %v4980_v51 = vpop.f32.mrb[41].mxu0  ;;  %v5161_v39 = vmul.f32 0.1, %v5113_v52 }
 0x289   : > { %v7417_v54 = vadd.f32 %v4980_v51, %v2772_v49  ;;  %5260 = vxpose.xlu1.b32.cont [11/16] (narrow) %v5196_v30, 8  ;;  %5284 = vxpose.xlu0.b32.cont [3/16] (narrow) %v5204_v47, 8  ;;  %v5160_v10 = vmul.f32 0.1, %v5112_v26 }
 0x28a   : > { %v5115_v11 = vadd.f32 %v7416_v32, %v9095_v48  ;;  %v5209_v61 = vmax.f32 %v5113_v52, %v5161_v39 }
 0x28b   : > { %v7071_v63 = vpop.f32.mrb[42].mxu1  ;;  %v7367_v34 = vpop.f32.mrb[42].mxu0  ;;  %v5114_v20 = vadd.f32 %v7417_v54, %v9095_v48  ;;  %v5208_v1 = vmax.f32 %v5112_v26, %v5160_v10 }
 0x28c   : > { %v7418_v8 = vadd.f32 %v7367_v34, %v7071_v63  ;;  %v2782_v13 = vpop.f32.mrb[43].mxu1  ;;  %v4990_v17 = vpop.f32.mrb[43].mxu0  ;;  %v5163_v24 = vmul.f32 0.1, %v5115_v11 }
 0x28d   : > { %v7419_v19 = vadd.f32 %v4990_v17, %v2782_v13  ;;  %5261 = vxpose.xlu1.b32.cont [12/16] (narrow) %v5197_v18, 8  ;;  %5285 = vxpose.xlu0.b32.cont [4/16] (narrow) %v5205_v36, 8  ;;  %v5162_v55 = vmul.f32 0.1, %v5114_v20 }
 0x28e   : > { %v5117_v60 = vadd.f32 %v7418_v8, %v9095_v48  ;;  %v5211_v0 = vmax.f32 %v5115_v11, %v5163_v24 }
 0x28f   : > { %v7074_v38 = vpop.f32.mrb[44].mxu1  ;;  %v7370_v27 = vpop.f32.mrb[44].mxu0  ;;  %v5116_v6 = vadd.f32 %v7419_v19, %v9095_v48  ;;  %v5210_v59 = vmax.f32 %v5114_v20, %v5162_v55 }
 0x290   : > { %v7420_v37 = vadd.f32 %v7370_v27, %v7074_v38  ;;  %v2792_v41 = vpop.f32.mrb[45].mxu1  ;;  %v5000_v45 = vpop.f32.mrb[45].mxu0  ;;  %v5165_v42 = vmul.f32 0.1, %v5117_v60 }
 0x291   : > { %v7421_v50 = vadd.f32 %v5000_v45, %v2792_v41  ;;  %5262 = vxpose.xlu1.b32.cont [13/16] (narrow) %v5198_v29, 8  ;;  %5286 = vxpose.xlu0.b32.cont [5/16] (narrow) %v5206_v33, 8  ;;  %v5164_v40 = vmul.f32 0.1, %v5116_v6 }
 0x292   : > { %v5119_v16 = vadd.f32 %v7420_v37, %v9095_v48  ;;  %v5213_v46 = vmax.f32 %v5117_v60, %v5165_v42 }
 0x293   : > { %v7077_v53 = vpop.f32.mrb[46].mxu1  ;;  %v7373_v31 = vpop.f32.mrb[46].mxu0  ;;  %v5118_v43 = vadd.f32 %v7421_v50, %v9095_v48  ;;  %v5212_v5 = vmax.f32 %v5116_v6, %v5164_v40 }
 0x294   : > { %v7422_v62 = vadd.f32 %v7373_v31, %v7077_v53  ;;  %v2802_v7 = vpop.f32.mrb[47].mxu1  ;;  %v5010_v9 = vpop.f32.mrb[47].mxu0  ;;  %v5167_v30 = vmul.f32 0.1, %v5119_v16 }
 0x295   : > { %v7423_v12 = vadd.f32 %v5010_v9, %v2802_v7  ;;  %5263 = vxpose.xlu1.b32.cont [14/16] (narrow) %v5199_v2, 8  ;;  %5287 = vxpose.xlu0.b32.cont [6/16] (narrow) %v5207_v35, 8  ;;  %v5166_v44 = vmul.f32 0.1, %v5118_v43 }
 0x296   : > { %v5121_v49 = vadd.f32 %v7422_v62, %v9095_v48  ;;  %v5215_v54 = vmax.f32 %v5119_v16, %v5167_v30 }
 0x297   : > { %v5120_v47 = vadd.f32 %v7423_v12, %v9095_v48  ;;  %v5214_v32 = vmax.f32 %v5118_v43, %v5166_v44 }
 0x298   : > { %v5169_v56 = vmul.f32 0.1, %v5121_v49 }
 0x299   : > { %5264 = vxpose.xlu1.b32.cont [15/16] (narrow) %v5200_v22, 8  ;;  %5288 = vxpose.xlu0.b32.cont [7/16] (narrow) %v5208_v1, 8  ;;  %v5168_v51 = vmul.f32 0.1, %v5120_v47 }
 0x29a   : > { %v5217_v28 = vmax.f32 %v5121_v49, %v5169_v56 }
 0x29b   : > { %v5216_v18 = vmax.f32 %v5120_v47, %v5168_v51 }
 0x29d   : > { %5265 = vxpose.xlu1.b32.end [16/16] (narrow) %v5201_v3, 8  ;;  %5289 = vxpose.xlu0.b32.cont [8/16] (narrow) %v5209_v61, 8 }
 0x2a1   : > { %5290 = vxpose.xlu0.b32.cont [9/16] (narrow) %v5210_v59, 8 }
 0x2a5   : > { %5291 = vxpose.xlu0.b32.cont [10/16] (narrow) %v5211_v0, 8 }
 0x2a9   : > { %5292 = vxpose.xlu0.b32.cont [11/16] (narrow) %v5212_v5, 8 }
 0x2ad   : > { %5293 = vxpose.xlu0.b32.cont [12/16] (narrow) %v5213_v46, 8 }
 0x2b1   : > { %5294 = vxpose.xlu0.b32.cont [13/16] (narrow) %v5214_v32, 8 }
 0x2b5   : > { %5295 = vxpose.xlu0.b32.cont [14/16] (narrow) %v5215_v54, 8 }
 0x2b9   : > { %5296 = vxpose.xlu0.b32.cont [15/16] (narrow) %v5216_v18, 8 }
 0x2bd   : > { %5297 = vxpose.xlu0.b32.end [16/16] (narrow) %v5217_v28, 8 }
 0x2c1   : > { %v5234_v58 = vpop.trf.xlu0 }
 0x2c2   : > { %5314 = vst [vmem:[%s192_s22] sm:$0xff] %v5234_v58 }
 0x2e1   : > { %v5266_v63 = vpop.trf.xlu1 }
 0x2e2   : > { %5315 = vst [vmem:[%s192_s22 + $0x8] sm:$0xff] %v5266_v63 }
 0x301   : > { %v5298_v34 = vpop.trf.xlu0 }
 0x302   : > { %5316 = vst [vmem:[%s192_s22 + $0x10] sm:$0xff] %v5298_v34 }
 0x303 PF: > { %s13_s14 = sadd.s32 1, %s7809_s14   ;;  %s9196_s12 = smov %s7805_s13 }
 0x304   : > { %p10_p5 = scmp.ge.s32.totalorder %s13_s14, 4   ;;  %s9197_s13 = smov %s9199_s15 }
 0x306   :  { %12 = sbr.rel (!%p10_p5) target bundleno = 2 (0x2), region = 79 }

</bundles_post_ra>
